<compile_context>
chip_gen: v5e
topology: v5e:2x2
jax: 0.10.0
libtpu: 0.0.40
codegen_flags: <defaults>
</compile_context>

<pallas_src>
import functools

import jax
import jax.numpy as jnp
from jax import lax
from jax.experimental import pallas as pl
from jax.experimental.pallas import tpu as pltpu

# Synthetic vocab sizes (stand-ins for ATOMIC_SYMBOL / BONDTYPE).
NUM_ATOMIC_SYMBOL = 16
NUM_BONDTYPE = 4
ATOM_EMB_DIM = 15                  # nn.Embedding(len(ATOMIC_SYMBOL), 15)
BOND_EMB_DIM = NUM_BONDTYPE        # nn.Embedding(len(BONDTYPE), len(BONDTYPE))
EDGE_ATTR_DIM = BOND_EMB_DIM + 1   # cat([bond_emb, edge_attr[:, 1:2]], -1)

LANE = 128            # lane-dense feature width for every in-kernel tensor
MAX_EDGE_TILE = 512   # edge rows per grid step once E gets large

# Contract dim 0 of both 2-D operands (transposed-LHS matmul).
TN_DIMS = (((0,), (0,)), ((), ()))


def _round_up(x, m):
    return ((x + m - 1) // m) * m


def _pad_mat(a, dtype):
    """Zero-pad a 2-D array to (LANE, LANE) (or (1, LANE) for bias rows)."""
    rows = 1 if a.shape[0] == 1 else LANE
    out = jnp.zeros((rows, LANE), dtype)
    return out.at[: a.shape[0], : a.shape[1]].set(a.astype(dtype))


def _vmem_limit_bytes(n_pad, edge_tile):
    """Rough VMEM budget: resident node buffers + double-buffered edge tiles
    + one-hot / iota temporaries + weights, with 2x headroom."""
    node = n_pad * LANE * (2 + 2 + 4 + 2 + 2) + n_pad * LANE * 4   # h,out,acc,hws,hwd,deg
    edge = 2 * edge_tile * (LANE * 4 + 8 * 4)                      # eaw + packed idx, 2-buffered
    tmp = n_pad * edge_tile * (4 + 2 + 2) + 4 * edge_tile * LANE * 4
    wts = 6 * LANE * LANE * 2 + 4 * LANE * 4
    est = node + edge + tmp + wts
    return int(min(100 * 2**20, max(32 * 2**20, 2 * est)))


# ----------------------------------------------------------------------------
# Fused per-layer kernel: edge MLP -> scatter-sum -> node MLP (-> tanh).
# Grid axis 0 iterates edge tiles (reduction); node-side tensors stay resident.
# ----------------------------------------------------------------------------
def _xgcn_layer_kernel(h_ref, eaw_ref, idx_ref, deg_ref,
                       w_es_ref, w_ed_ref, w_e2_ref, b_e2_ref,
                       w_nh_ref, w_na_ref, b_n1_ref, w_n2_ref, b_n2_ref,
                       o_ref,
                       acc_ref, hws_ref, hwd_ref,
                       *, apply_tanh):
    k = pl.program_id(0)
    n_pad = h_ref.shape[0]
    te = eaw_ref.shape[0]

    # ---- first edge tile: project h once (bf16 scratch), seed accumulator ---
    @pl.when(k == 0)
    def _init():
        h_bf = h_ref[...]                                  # already bf16
        hws_ref[...] = jnp.dot(h_bf, w_es_ref[...],
                               preferred_element_type=jnp.float32
                               ).astype(jnp.bfloat16)
        hwd_ref[...] = jnp.dot(h_bf, w_ed_ref[...],
                               preferred_element_type=jnp.float32
                               ).astype(jnp.bfloat16)
        # aggr='sum': each real incoming edge contributes b_e2 exactly once, so
        # fold it here instead of a per-tile [TE,128] broadcast add.
        acc_ref[...] = deg_ref[...] * b_e2_ref[...]

    # ---- per-edge-tile: gathers / scatter via in-register one-hot matmuls ---
    idx = idx_ref[...]                 # [8, TE] int32 (row0=src, row1=dst, -1 pad)
    src_row = idx[0:1, :]              # [1, TE]
    dst_row = idx[1:2, :]              # [1, TE]

    iota_ne = lax.broadcasted_iota(jnp.int32, (n_pad, te), 0)
    oh_src = (iota_ne == src_row).astype(jnp.bfloat16)     # [N, TE] bf16 direct
    oh_dst = (iota_ne == dst_row).astype(jnp.bfloat16)     # [N, TE]

    hws_bf = hws_ref[...]              # bf16, no per-tile convert
    hwd_bf = hwd_ref[...]
    # gather h[src]W_src / h[dst]W_dst: contract the node axis (transposed LHS)
    hs = lax.dot_general(oh_src, hws_bf, TN_DIMS,
                         preferred_element_type=jnp.float32)        # [TE, F]
    hd = lax.dot_general(oh_dst, hwd_bf, TN_DIMS,
                         preferred_element_type=jnp.float32)        # [TE, F]

    # edge MLP (split weights == Linear on the concat); ea@W_ea + b_e1 was
    # precomputed outside the kernel and streamed in as eaw_ref.
    m = jnp.maximum(hs + hd + eaw_ref[...], 0.0)
    m = jnp.dot(m.astype(jnp.bfloat16), w_e2_ref[...],
                preferred_element_type=jnp.float32)                 # [TE, F]

    # aggr='sum' over destination nodes: reuse oh_dst with a standard matmul.
    acc_ref[...] += jnp.dot(oh_dst, m.astype(jnp.bfloat16),
                            preferred_element_type=jnp.float32)     # [N, F]

    # ---- last edge tile: node MLP (+ inter-layer tanh), write bf16 output ---
    @pl.when(k == pl.num_programs(0) - 1)
    def _finalize():
        hh = jnp.dot(h_ref[...], w_nh_ref[...],
                     preferred_element_type=jnp.float32)
        hh = hh + jnp.dot(acc_ref[...].astype(jnp.bfloat16), w_na_ref[...],
                          preferred_element_type=jnp.float32)
        hh = jnp.maximum(hh + b_n1_ref[...], 0.0)
        out = jnp.dot(hh.astype(jnp.bfloat16), w_n2_ref[...],
                      preferred_element_type=jnp.float32) + b_n2_ref[...]
        if apply_tanh:
            out = jnp.tanh(out)        # f32 tanh (works on v5e, no bf16 EUP)
        o_ref[...] = out.astype(o_ref.dtype)


def xgcn_layer(h_pad, eaw_pad, idx_pack, deg_col, lw, *, apply_tanh, edge_tile):
    """One fused XGCNConv layer.  h_pad: [N_pad, 128] bf16 -> [N_pad, 128] bf16."""
    # TODO(synk): very large graphs need node-axis tiling (per-node-block
    #             accumulator) and a megacore 'parallel' node axis for v7x's
    #             second TensorCore; here node-side buffers stay VMEM-resident.
    n_pad = h_pad.shape[0]
    e_pad = eaw_pad.shape[0]
    grid = (e_pad // edge_tile,)

    full = lambda k: (0, 0)
    etile = lambda k: (k, 0)

    kernel = functools.partial(_xgcn_layer_kernel, apply_tanh=apply_tanh)
    return pl.pallas_call(
        kernel,
        out_shape=jax.ShapeDtypeStruct((n_pad, LANE), jnp.bfloat16),
        grid=grid,
        in_specs=[
            pl.BlockSpec((n_pad, LANE), full),              # h (bf16, resident)
            pl.BlockSpec((edge_tile, LANE), etile),         # ea@W_ea + b_e1 tiles
            pl.BlockSpec((8, edge_tile), lambda k: (0, k)),  # packed src/dst (lane-dense)
            pl.BlockSpec((n_pad, 1), full),                 # in-degree (b_e2 fold)
            pl.BlockSpec((LANE, LANE), full),               # W_edge1_src
            pl.BlockSpec((LANE, LANE), full),               # W_edge1_dst
            pl.BlockSpec((LANE, LANE), full),               # W_edge2
            pl.BlockSpec((1, LANE), full),                  # b_edge2
            pl.BlockSpec((LANE, LANE), full),               # W_node1_h
            pl.BlockSpec((LANE, LANE), full),               # W_node1_agg
            pl.BlockSpec((1, LANE), full),                  # b_node1
            pl.BlockSpec((LANE, LANE), full),               # W_node2
            pl.BlockSpec((1, LANE), full),                  # b_node2
        ],
        out_specs=pl.BlockSpec((n_pad, LANE), full),
        scratch_shapes=[
            pltpu.VMEM((n_pad, LANE), jnp.float32),         # aggregation accum
            pltpu.VMEM((n_pad, LANE), jnp.bfloat16),        # h @ W_edge1_src (bf16)
            pltpu.VMEM((n_pad, LANE), jnp.bfloat16),        # h @ W_edge1_dst (bf16)
        ],
        compiler_params=pltpu.CompilerParams(
            dimension_semantics=("arbitrary",),             # edge axis = reduction
            vmem_limit_bytes=_vmem_limit_bytes(n_pad, edge_tile)),
    )(h_pad, eaw_pad, idx_pack, deg_col,
      lw["w_e1_src"], lw["w_e1_dst"], lw["w_e2"], lw["b_e2"],
      lw["w_n1_h"], lw["w_n1_agg"], lw["b_n1"], lw["w_n2"], lw["b_n2"])


# ----------------------------------------------------------------------------
# Parameter construction: concat-free split weights, zero-padded to (128, 128)
# bf16 for the kernel; the ea-projection pieces stay raw f32 for the tiny
# wrapper-side precompute.
# ----------------------------------------------------------------------------
def init_params(key):
    h0 = ATOM_EMB_DIM
    edge_dimses = [[2 * h0 + EDGE_ATTR_DIM, 32, 32],
                   [2 * 32 + EDGE_ATTR_DIM, 32, 32]]
    node_dimses = [[h0 + 32, 32, 32],
                   [32 + 32, 32, 16]]
    h_dims = [h0, 32]          # input width of h for each layer

    keys = iter(jax.random.split(key, 64))

    def linear(din, dout):
        w = jax.random.normal(next(keys), (din, dout), jnp.float32) * 0.1
        b = jax.random.normal(next(keys), (dout,), jnp.float32) * 0.01
        return w, b

    atom_emb = jax.random.normal(
        next(keys), (NUM_ATOMIC_SYMBOL, ATOM_EMB_DIM), jnp.float32) * 0.1
    bond_emb = jax.random.normal(
        next(keys), (NUM_BONDTYPE, BOND_EMB_DIM), jnp.float32) * 0.1

    layers = []
    for li, (ed, nd) in enumerate(zip(edge_dimses, node_dimses)):
        h_in = h_dims[li]
        w_e1, b_e1 = linear(ed[0], ed[1])
        w_e2, b_e2 = linear(ed[1], ed[2])
        w_n1, b_n1 = linear(nd[0], nd[1])
        w_n2, b_n2 = linear(nd[1], nd[2])
        layers.append({
            # edge MLP first linear, split over the concat rows
            "w_e1_src":   _pad_mat(w_e1[:h_in], jnp.bfloat16),
            "w_e1_dst":   _pad_mat(w_e1[h_in:2 * h_in], jnp.bfloat16),
            "w_e1_ea_raw": w_e1[2 * h_in:],     # [5, 32] f32 (wrapper precompute)
            "b_e1_raw":    b_e1,                # [32]   f32 (wrapper precompute)
            "w_e2":       _pad_mat(w_e2, jnp.bfloat16),
            "b_e2":       _pad_mat(b_e2[None, :], jnp.float32),
            # node MLP first linear, split over the concat rows
            "w_n1_h":     _pad_mat(w_n1[:h_in], jnp.bfloat16),
            "w_n1_agg":   _pad_mat(w_n1[h_in:], jnp.bfloat16),
            "b_n1":       _pad_mat(b_n1[None, :], jnp.float32),
            "w_n2":       _pad_mat(w_n2, jnp.bfloat16),
            "b_n2":       _pad_mat(b_n2[None, :], jnp.float32),
        })

    return {"atom_emb": atom_emb, "bond_emb": bond_emb,
            "layers": layers, "final_dim": node_dimses[-1][-1]}


# ----------------------------------------------------------------------------
# Forward pass.  Embedding lookups, the tiny ea@W_ea precompute, in-degree and
# the final graph mean are boundary ops kept in plain JAX; all per-layer
# message passing runs inside one fused Pallas call per layer.
# ----------------------------------------------------------------------------
def old_xgcn_forward(params, x, edge_index, edge_attr, batch=None,
                     num_graphs=None):
    n_nodes = x.shape[0]
    n_edges = edge_index.shape[1]

    h = params["atom_emb"][x]                                        # [N, 15]
    bond = params["bond_emb"][edge_attr[:, 0].astype(jnp.int32)]     # [E, 4]
    ea = jnp.concatenate([bond, edge_attr[:, 1:2]], axis=-1)         # [E, 5]

    # Lane-dense / sublane-aligned padding (done once, outside the kernels).
    n_pad = _round_up(max(n_nodes, 8), LANE)
    edge_tile = min(MAX_EDGE_TILE, _round_up(max(n_edges, 8), LANE))
    if n_pad >= 2048:           # keep [N_pad, TE] temporaries inside v7x's 64 MiB
        edge_tile = min(edge_tile, 256)
    e_pad = _round_up(max(n_edges, 8), edge_tile)

    # h is carried in bf16 across layers (matmuls consume bf16 anyway).
    h_pad = jnp.zeros((n_pad, LANE), jnp.bfloat16)
    h_pad = h_pad.at[:n_nodes, :h.shape[1]].set(h.astype(jnp.bfloat16))

    src = edge_index[0].astype(jnp.int32)
    dst = edge_index[1].astype(jnp.int32)
    # Lane-dense packed indices: row 0 = src, row 1 = dst, padded edges = -1
    # (they never match any node in the one-hot compare -> contribute nothing).
    idx_pack = jnp.full((8, e_pad), -1, jnp.int32)
    idx_pack = idx_pack.at[0, :n_edges].set(src)
    idx_pack = idx_pack.at[1, :n_edges].set(dst)

    # Per-node in-degree (real edges only) -> folds b_e2 out of the hot loop.
    deg = jax.ops.segment_sum(jnp.ones((n_edges,), jnp.float32), dst,
                              num_segments=n_pad)
    deg_col = deg[:, None]                                           # [N_pad, 1]

    layers = params["layers"]
    n_layers = len(layers)
    for i, lw in enumerate(layers):
        # Precompute ea @ W_ea + b_e1 outside the kernel ([E,5]@[5,32] is tiny);
        # saves a 96%-zero-K MXU pass + two broadcast adds per edge tile.
        eaw = ea @ lw["w_e1_ea_raw"] + lw["b_e1_raw"][None, :]       # [E, 32]
        eaw_pad = jnp.zeros((e_pad, LANE), jnp.float32)
        eaw_pad = eaw_pad.at[:n_edges, :eaw.shape[1]].set(eaw)
        h_pad = xgcn_layer(h_pad, eaw_pad, idx_pack, deg_col, lw,
                           apply_tanh=(i + 1 < n_layers),
                           edge_tile=edge_tile)

    h_out = h_pad[:n_nodes, : params["final_dim"]].astype(jnp.float32)  # [N, 16]

    if batch is not None:
        # scatter(h, batch, reduce='mean').mean(-1); num_graphs must be static.
        assert num_graphs is not None, "pass num_graphs statically with batch"
        sums = jax.ops.segment_sum(h_out, batch, num_segments=num_graphs)
        counts = jax.ops.segment_sum(
            jnp.ones((n_nodes, 1), h_out.dtype), batch, num_segments=num_graphs)
        return (sums / jnp.maximum(counts, 1.0)).mean(-1)            # [G]
    return jnp.mean(h_out)            # batch=None -> h.mean((-2, -1)) -> scalar


# ----------------------------------------------------------------------------
if __name__ == "__main__":
    key = jax.random.PRNGKey(0)
    k_par, k_x, k_ei, k_bt, k_ef = jax.random.split(key, 5)

    params = init_params(k_par)

    N, E = 16, 32
    x = jax.random.randint(k_x, (N,), 0, NUM_ATOMIC_SYMBOL, dtype=jnp.int32)
    edge_index = jax.random.randint(k_ei, (2, E), 0, N, dtype=jnp.int32)
    bond_type = jax.random.randint(k_bt, (E,), 0, NUM_BONDTYPE).astype(jnp.float32)
    bond_feat = jax.random.uniform(k_ef, (E,), jnp.float32)
    edge_attr = jnp.stack([bond_type, bond_feat], axis=-1)           # [E, 2]

    out = old_xgcn_forward(params, x, edge_index, edge_attr, batch=None)
    out = jax.block_until_ready(out)
    assert out.shape == ()   # batch=None -> scalar (mean over nodes & features)
    print("KERNEL_OK")
</pallas_src>

<mosaic_0001>
module attributes {stable_mosaic.version = 11 : i64} {
  func.func @_xgcn_layer_kernel(%arg0: i32, %arg1: memref<128x128xbf16, #tpu.memory_space<vmem>>, %arg2: memref<128x128xf32, #tpu.memory_space<vmem>>, %arg3: memref<8x128xi32, #tpu.memory_space<vmem>>, %arg4: memref<128x1xf32, #tpu.memory_space<vmem>>, %arg5: memref<128x128xbf16, #tpu.memory_space<vmem>>, %arg6: memref<128x128xbf16, #tpu.memory_space<vmem>>, %arg7: memref<128x128xbf16, #tpu.memory_space<vmem>>, %arg8: memref<1x128xf32, #tpu.memory_space<vmem>>, %arg9: memref<128x128xbf16, #tpu.memory_space<vmem>>, %arg10: memref<128x128xbf16, #tpu.memory_space<vmem>>, %arg11: memref<1x128xf32, #tpu.memory_space<vmem>>, %arg12: memref<128x128xbf16, #tpu.memory_space<vmem>>, %arg13: memref<1x128xf32, #tpu.memory_space<vmem>>, %arg14: memref<128x128xbf16, #tpu.memory_space<vmem>>, %arg15: memref<128x128xf32, #tpu.memory_space<vmem>>, %arg16: memref<128x128xbf16, #tpu.memory_space<vmem>>, %arg17: memref<128x128xbf16, #tpu.memory_space<vmem>>) attributes {dimension_semantics = [#tpu.dimension_semantics<arbitrary>], iteration_bounds = array<i64: 1>, scalar_prefetch = 0 : i64, scratch_operands = 3 : i64, tpu.core_type = #tpu.core_type<tc>, window_params = [{pipeline_mode = #tpu.pipeline_mode<synchronous>, transform_indices = @transform_0, window_bounds = array<i64: 128, 128>}, {transform_indices = @transform_1, window_bounds = array<i64: 128, 128>}, {transform_indices = @transform_2, window_bounds = array<i64: 8, 128>}, {pipeline_mode = #tpu.pipeline_mode<synchronous>, transform_indices = @transform_3, window_bounds = array<i64: 128, 1>}, {pipeline_mode = #tpu.pipeline_mode<synchronous>, transform_indices = @transform_4, window_bounds = array<i64: 128, 128>}, {pipeline_mode = #tpu.pipeline_mode<synchronous>, transform_indices = @transform_5, window_bounds = array<i64: 128, 128>}, {pipeline_mode = #tpu.pipeline_mode<synchronous>, transform_indices = @transform_6, window_bounds = array<i64: 128, 128>}, {pipeline_mode = #tpu.pipeline_mode<synchronous>, transform_indices = @transform_7, window_bounds = array<i64: 1, 128>}, {pipeline_mode = #tpu.pipeline_mode<synchronous>, transform_indices = @transform_8, window_bounds = array<i64: 128, 128>}, {pipeline_mode = #tpu.pipeline_mode<synchronous>, transform_indices = @transform_9, window_bounds = array<i64: 128, 128>}, {pipeline_mode = #tpu.pipeline_mode<synchronous>, transform_indices = @transform_10, window_bounds = array<i64: 1, 128>}, {pipeline_mode = #tpu.pipeline_mode<synchronous>, transform_indices = @transform_11, window_bounds = array<i64: 128, 128>}, {pipeline_mode = #tpu.pipeline_mode<synchronous>, transform_indices = @transform_12, window_bounds = array<i64: 1, 128>}, {pipeline_mode = #tpu.pipeline_mode<synchronous>, transform_indices = @transform_13, window_bounds = array<i64: 128, 128>}]} {
    %c0_i32 = arith.constant 0 : i32
    %0 = arith.cmpi eq, %arg0, %c0_i32 : i32
    %1 = arith.extui %0 : i1 to i32
    %c0_i32_0 = arith.constant 0 : i32
    %2 = arith.cmpi ne, %1, %c0_i32_0 : i32
    scf.if %2 {
      %c0_20 = arith.constant 0 : index
      %c0_21 = arith.constant 0 : index
      %37 = vector.load %arg1[%c0_20, %c0_21] : memref<128x128xbf16, #tpu.memory_space<vmem>>, vector<128x128xbf16>
      %c0_22 = arith.constant 0 : index
      %c0_23 = arith.constant 0 : index
      %38 = vector.load %arg5[%c0_22, %c0_23] : memref<128x128xbf16, #tpu.memory_space<vmem>>, vector<128x128xbf16>
      %cst_24 = arith.constant dense<0.000000e+00> : vector<128x128xf32>
      %39 = tpu.matmul %37, %38, %cst_24 {dimension_numbers = #tpu.dot_dimension_numbers<[1], [0], [0], [1], [0, 0, 1, 1], [], []>} : vector<128x128xbf16>, vector<128x128xbf16>, vector<128x128xf32> -> vector<128x128xf32>
      %40 = arith.truncf %39 : vector<128x128xf32> to vector<128x128xbf16>
      %c0_25 = arith.constant 0 : index
      %c0_26 = arith.constant 0 : index
      %41 = vector.load %arg16[%c0_25, %c0_26] : memref<128x128xbf16, #tpu.memory_space<vmem>>, vector<128x128xbf16>
      tpu.vector_store %arg16[%c0_25, %c0_26], %40 {strides = array<i32>} : memref<128x128xbf16, #tpu.memory_space<vmem>>, vector<128x128xbf16>,
      %c0_27 = arith.constant 0 : index
      %c0_28 = arith.constant 0 : index
      %42 = vector.load %arg6[%c0_27, %c0_28] : memref<128x128xbf16, #tpu.memory_space<vmem>>, vector<128x128xbf16>
      %cst_29 = arith.constant dense<0.000000e+00> : vector<128x128xf32>
      %43 = tpu.matmul %37, %42, %cst_29 {dimension_numbers = #tpu.dot_dimension_numbers<[1], [0], [0], [1], [0, 0, 1, 1], [], []>} : vector<128x128xbf16>, vector<128x128xbf16>, vector<128x128xf32> -> vector<128x128xf32>
      %44 = arith.truncf %43 : vector<128x128xf32> to vector<128x128xbf16>
      %c0_30 = arith.constant 0 : index
      %c0_31 = arith.constant 0 : index
      %45 = vector.load %arg17[%c0_30, %c0_31] : memref<128x128xbf16, #tpu.memory_space<vmem>>, vector<128x128xbf16>
      tpu.vector_store %arg17[%c0_30, %c0_31], %44 {strides = array<i32>} : memref<128x128xbf16, #tpu.memory_space<vmem>>, vector<128x128xbf16>,
      %c0_32 = arith.constant 0 : index
      %c0_33 = arith.constant 0 : index
      %46 = vector.load %arg4[%c0_32, %c0_33] : memref<128x1xf32, #tpu.memory_space<vmem>>, vector<128x1xf32>
      %c0_34 = arith.constant 0 : index
      %c0_35 = arith.constant 0 : index
      %47 = vector.load %arg8[%c0_34, %c0_35] : memref<1x128xf32, #tpu.memory_space<vmem>>, vector<1x128xf32>
      %48 = vector.broadcast %46 : vector<128x1xf32> to vector<128x128xf32>
      %49 = vector.broadcast %47 : vector<1x128xf32> to vector<128x128xf32>
      %50 = arith.mulf %48, %49 : vector<128x128xf32>
      %c0_36 = arith.constant 0 : index
      %c0_37 = arith.constant 0 : index
      %51 = vector.load %arg15[%c0_36, %c0_37] : memref<128x128xf32, #tpu.memory_space<vmem>>, vector<128x128xf32>
      tpu.vector_store %arg15[%c0_36, %c0_37], %50 {strides = array<i32>} : memref<128x128xf32, #tpu.memory_space<vmem>>, vector<128x128xf32>,
    } else {
    }
    %c0 = arith.constant 0 : index
    %c0_1 = arith.constant 0 : index
    %3 = vector.load %arg3[%c0, %c0_1] : memref<8x128xi32, #tpu.memory_space<vmem>>, vector<8x128xi32>
    %4 = vector.extract_strided_slice %3 {offsets = [0, 0], sizes = [1, 128], strides = [1, 1]} : vector<8x128xi32> to vector<1x128xi32>
    %5 = vector.extract_strided_slice %3 {offsets = [1, 0], sizes = [1, 128], strides = [1, 1]} : vector<8x128xi32> to vector<1x128xi32>
    %6 = tpu.iota {dimensions = array<i32: 0>} : vector<128x128xi32>
    %7 = vector.broadcast %4 : vector<1x128xi32> to vector<128x128xi32>
    %8 = arith.cmpi eq, %6, %7 : vector<128x128xi32>
    %9 = arith.extui %8 : vector<128x128xi1> to vector<128x128xi32>
    %10 = arith.sitofp %9 : vector<128x128xi32> to vector<128x128xf32>
    %11 = arith.truncf %10 : vector<128x128xf32> to vector<128x128xbf16>
    %12 = vector.broadcast %5 : vector<1x128xi32> to vector<128x128xi32>
    %13 = arith.cmpi eq, %6, %12 : vector<128x128xi32>
    %14 = arith.extui %13 : vector<128x128xi1> to vector<128x128xi32>
    %15 = arith.sitofp %14 : vector<128x128xi32> to vector<128x128xf32>
    %16 = arith.truncf %15 : vector<128x128xf32> to vector<128x128xbf16>
    %c0_2 = arith.constant 0 : index
    %c0_3 = arith.constant 0 : index
    %17 = vector.load %arg16[%c0_2, %c0_3] : memref<128x128xbf16, #tpu.memory_space<vmem>>, vector<128x128xbf16>
    %c0_4 = arith.constant 0 : index
    %c0_5 = arith.constant 0 : index
    %18 = vector.load %arg17[%c0_4, %c0_5] : memref<128x128xbf16, #tpu.memory_space<vmem>>, vector<128x128xbf16>
    %cst = arith.constant dense<0.000000e+00> : vector<128x128xf32>
    %19 = tpu.matmul %11, %17, %cst {dimension_numbers = #tpu.dot_dimension_numbers<[0], [0], [1], [1], [0, 1, 1, 1], [], []>} : vector<128x128xbf16>, vector<128x128xbf16>, vector<128x128xf32> -> vector<128x128xf32>
    %cst_6 = arith.constant dense<0.000000e+00> : vector<128x128xf32>
    %20 = tpu.matmul %16, %18, %cst_6 {dimension_numbers = #tpu.dot_dimension_numbers<[0], [0], [1], [1], [0, 1, 1, 1], [], []>} : vector<128x128xbf16>, vector<128x128xbf16>, vector<128x128xf32> -> vector<128x128xf32>
    %21 = arith.addf %19, %20 : vector<128x128xf32>
    %c0_7 = arith.constant 0 : index
    %c0_8 = arith.constant 0 : index
    %22 = vector.load %arg2[%c0_7, %c0_8] : memref<128x128xf32, #tpu.memory_space<vmem>>, vector<128x128xf32>
    %23 = arith.addf %21, %22 : vector<128x128xf32>
    %cst_9 = arith.constant 0.000000e+00 : f32
    %24 = vector.broadcast %cst_9 : f32 to vector<128x128xf32>
    %25 = arith.maximumf %23, %24 : vector<128x128xf32>
    %26 = arith.truncf %25 : vector<128x128xf32> to vector<128x128xbf16>
    %c0_10 = arith.constant 0 : index
    %c0_11 = arith.constant 0 : index
    %27 = vector.load %arg7[%c0_10, %c0_11] : memref<128x128xbf16, #tpu.memory_space<vmem>>, vector<128x128xbf16>
    %cst_12 = arith.constant dense<0.000000e+00> : vector<128x128xf32>
    %28 = tpu.matmul %26, %27, %cst_12 {dimension_numbers = #tpu.dot_dimension_numbers<[1], [0], [0], [1], [0, 0, 1, 1], [], []>} : vector<128x128xbf16>, vector<128x128xbf16>, vector<128x128xf32> -> vector<128x128xf32>
    %c0_13 = arith.constant 0 : index
    %c0_14 = arith.constant 0 : index
    %29 = vector.load %arg15[%c0_13, %c0_14] : memref<128x128xf32, #tpu.memory_space<vmem>>, vector<128x128xf32>
    %30 = arith.truncf %28 : vector<128x128xf32> to vector<128x128xbf16>
    %cst_15 = arith.constant dense<0.000000e+00> : vector<128x128xf32>
    %31 = tpu.matmul %16, %30, %cst_15 {dimension_numbers = #tpu.dot_dimension_numbers<[1], [0], [0], [1], [0, 0, 1, 1], [], []>} : vector<128x128xbf16>, vector<128x128xbf16>, vector<128x128xf32> -> vector<128x128xf32>
    %32 = arith.addf %29, %31 : vector<128x128xf32>
    %c0_16 = arith.constant 0 : index
    %c0_17 = arith.constant 0 : index
    %33 = vector.load %arg15[%c0_16, %c0_17] : memref<128x128xf32, #tpu.memory_space<vmem>>, vector<128x128xf32>
    tpu.vector_store %arg15[%c0_16, %c0_17], %32 {strides = array<i32>} : memref<128x128xf32, #tpu.memory_space<vmem>>, vector<128x128xf32>,
    %c0_i32_18 = arith.constant 0 : i32
    %34 = arith.cmpi eq, %arg0, %c0_i32_18 : i32
    %35 = arith.extui %34 : i1 to i32
    %c0_i32_19 = arith.constant 0 : i32
    %36 = arith.cmpi ne, %35, %c0_i32_19 : i32
    scf.if %36 {
      %c0_20 = arith.constant 0 : index
      %c0_21 = arith.constant 0 : index
      %37 = vector.load %arg1[%c0_20, %c0_21] : memref<128x128xbf16, #tpu.memory_space<vmem>>, vector<128x128xbf16>
      %c0_22 = arith.constant 0 : index
      %c0_23 = arith.constant 0 : index
      %38 = vector.load %arg9[%c0_22, %c0_23] : memref<128x128xbf16, #tpu.memory_space<vmem>>, vector<128x128xbf16>
      %cst_24 = arith.constant dense<0.000000e+00> : vector<128x128xf32>
      %39 = tpu.matmul %37, %38, %cst_24 {dimension_numbers = #tpu.dot_dimension_numbers<[1], [0], [0], [1], [0, 0, 1, 1], [], []>} : vector<128x128xbf16>, vector<128x128xbf16>, vector<128x128xf32> -> vector<128x128xf32>
      %c0_25 = arith.constant 0 : index
      %c0_26 = arith.constant 0 : index
      %40 = vector.load %arg15[%c0_25, %c0_26] : memref<128x128xf32, #tpu.memory_space<vmem>>, vector<128x128xf32>
      %41 = arith.truncf %40 : vector<128x128xf32> to vector<128x128xbf16>
      %c0_27 = arith.constant 0 : index
      %c0_28 = arith.constant 0 : index
      %42 = vector.load %arg10[%c0_27, %c0_28] : memref<128x128xbf16, #tpu.memory_space<vmem>>, vector<128x128xbf16>
      %cst_29 = arith.constant dense<0.000000e+00> : vector<128x128xf32>
      %43 = tpu.matmul %41, %42, %cst_29 {dimension_numbers = #tpu.dot_dimension_numbers<[1], [0], [0], [1], [0, 0, 1, 1], [], []>} : vector<128x128xbf16>, vector<128x128xbf16>, vector<128x128xf32> -> vector<128x128xf32>
      %44 = arith.addf %39, %43 : vector<128x128xf32>
      %c0_30 = arith.constant 0 : index
      %c0_31 = arith.constant 0 : index
      %45 = vector.load %arg11[%c0_30, %c0_31] : memref<1x128xf32, #tpu.memory_space<vmem>>, vector<1x128xf32>
      %46 = vector.broadcast %45 : vector<1x128xf32> to vector<128x128xf32>
      %47 = arith.addf %44, %46 : vector<128x128xf32>
      %cst_32 = arith.constant 0.000000e+00 : f32
      %48 = vector.broadcast %cst_32 : f32 to vector<128x128xf32>
      %49 = arith.maximumf %47, %48 : vector<128x128xf32>
      %50 = arith.truncf %49 : vector<128x128xf32> to vector<128x128xbf16>
      %c0_33 = arith.constant 0 : index
      %c0_34 = arith.constant 0 : index
      %51 = vector.load %arg12[%c0_33, %c0_34] : memref<128x128xbf16, #tpu.memory_space<vmem>>, vector<128x128xbf16>
      %cst_35 = arith.constant dense<0.000000e+00> : vector<128x128xf32>
      %52 = tpu.matmul %50, %51, %cst_35 {dimension_numbers = #tpu.dot_dimension_numbers<[1], [0], [0], [1], [0, 0, 1, 1], [], []>} : vector<128x128xbf16>, vector<128x128xbf16>, vector<128x128xf32> -> vector<128x128xf32>
      %c0_36 = arith.constant 0 : index
      %c0_37 = arith.constant 0 : index
      %53 = vector.load %arg13[%c0_36, %c0_37] : memref<1x128xf32, #tpu.memory_space<vmem>>, vector<1x128xf32>
      %54 = vector.broadcast %53 : vector<1x128xf32> to vector<128x128xf32>
      %55 = arith.addf %52, %54 : vector<128x128xf32>
      %56 = math.tanh %55 : vector<128x128xf32>
      %57 = arith.truncf %56 : vector<128x128xf32> to vector<128x128xbf16>
      %c0_38 = arith.constant 0 : index
      %c0_39 = arith.constant 0 : index
      %58 = vector.load %arg14[%c0_38, %c0_39] : memref<128x128xbf16, #tpu.memory_space<vmem>>, vector<128x128xbf16>
      tpu.vector_store %arg14[%c0_38, %c0_39], %57 {strides = array<i32>} : memref<128x128xbf16, #tpu.memory_space<vmem>>, vector<128x128xbf16>,
    } else {
    }
    return
  }
  func.func @transform_0(%arg0: i32) -> (i32, i32) {
    %c0_i32 = arith.constant 0 : i32
    %c0_i32_0 = arith.constant 0 : i32
    %c0_i32_1 = arith.constant 0 : i32
    return %c0_i32, %c0_i32_0 : i32, i32
  }
  func.func @transform_1(%arg0: i32) -> (i32, i32) {
    %c0_i32 = arith.constant 0 : i32
    %c0_i32_0 = arith.constant 0 : i32
    return %arg0, %c0_i32 : i32, i32
  }
  func.func @transform_2(%arg0: i32) -> (i32, i32) {
    %c0_i32 = arith.constant 0 : i32
    %c0_i32_0 = arith.constant 0 : i32
    return %c0_i32, %arg0 : i32, i32
  }
  func.func @transform_3(%arg0: i32) -> (i32, i32) {
    %c0_i32 = arith.constant 0 : i32
    %c0_i32_0 = arith.constant 0 : i32
    %c0_i32_1 = arith.constant 0 : i32
    return %c0_i32, %c0_i32_0 : i32, i32
  }
  func.func @transform_4(%arg0: i32) -> (i32, i32) {
    %c0_i32 = arith.constant 0 : i32
    %c0_i32_0 = arith.constant 0 : i32
    %c0_i32_1 = arith.constant 0 : i32
    return %c0_i32, %c0_i32_0 : i32, i32
  }
  func.func @transform_5(%arg0: i32) -> (i32, i32) {
    %c0_i32 = arith.constant 0 : i32
    %c0_i32_0 = arith.constant 0 : i32
    %c0_i32_1 = arith.constant 0 : i32
    return %c0_i32, %c0_i32_0 : i32, i32
  }
  func.func @transform_6(%arg0: i32) -> (i32, i32) {
    %c0_i32 = arith.constant 0 : i32
    %c0_i32_0 = arith.constant 0 : i32
    %c0_i32_1 = arith.constant 0 : i32
    return %c0_i32, %c0_i32_0 : i32, i32
  }
  func.func @transform_7(%arg0: i32) -> (i32, i32) {
    %c0_i32 = arith.constant 0 : i32
    %c0_i32_0 = arith.constant 0 : i32
    %c0_i32_1 = arith.constant 0 : i32
    return %c0_i32, %c0_i32_0 : i32, i32
  }
  func.func @transform_8(%arg0: i32) -> (i32, i32) {
    %c0_i32 = arith.constant 0 : i32
    %c0_i32_0 = arith.constant 0 : i32
    %c0_i32_1 = arith.constant 0 : i32
    return %c0_i32, %c0_i32_0 : i32, i32
  }
  func.func @transform_9(%arg0: i32) -> (i32, i32) {
    %c0_i32 = arith.constant 0 : i32
    %c0_i32_0 = arith.constant 0 : i32
    %c0_i32_1 = arith.constant 0 : i32
    return %c0_i32, %c0_i32_0 : i32, i32
  }
  func.func @transform_10(%arg0: i32) -> (i32, i32) {
    %c0_i32 = arith.constant 0 : i32
    %c0_i32_0 = arith.constant 0 : i32
    %c0_i32_1 = arith.constant 0 : i32
    return %c0_i32, %c0_i32_0 : i32, i32
  }
  func.func @transform_11(%arg0: i32) -> (i32, i32) {
    %c0_i32 = arith.constant 0 : i32
    %c0_i32_0 = arith.constant 0 : i32
    %c0_i32_1 = arith.constant 0 : i32
    return %c0_i32, %c0_i32_0 : i32, i32
  }
  func.func @transform_12(%arg0: i32) -> (i32, i32) {
    %c0_i32 = arith.constant 0 : i32
    %c0_i32_0 = arith.constant 0 : i32
    %c0_i32_1 = arith.constant 0 : i32
    return %c0_i32, %c0_i32_0 : i32, i32
  }
  func.func @transform_13(%arg0: i32) -> (i32, i32) {
    %c0_i32 = arith.constant 0 : i32
    %c0_i32_0 = arith.constant 0 : i32
    %c0_i32_1 = arith.constant 0 : i32
    return %c0_i32, %c0_i32_0 : i32, i32
  }
}

</mosaic_0001>

<bundles_post_ra>
// kernel: tpu_custom_call.1
= control target key start
LH: loop header
LB: loop body
LE: loop exit
PB: predicated region body
PF: predicated region fallthrough
CT: control target
= control target key end

     0   :  { %18 = vsyncpa [#allocation6], 0  ;;  %s3289_s0 = inlined_call_operand.hbm [shape: bf16[128,128], index: 0, kind: input, shape index: {}]   ;;  %s3290_s1 = inlined_call_operand.vmem [shape: f32[128,128], index: 1, kind: input, shape index: {}]   ;;  %s3291_s2 = inlined_call_operand.hbm [shape: s32[8,128], index: 2, kind: input, shape index: {}]   ;;  %s3292_s3 = inlined_call_operand.vmem [shape: f32[128,1], index: 3, kind: input, shape index: {}]   ;;  %s3293_s4 = inlined_call_operand.hbm [shape: bf16[128,128], index: 4, kind: input, shape index: {}]   ;;  %s3294_s5 = inlined_call_operand.hbm [shape: bf16[128,128], index: 5, kind: input, shape index: {}]   ;;  %s3295_s6 = inlined_call_operand.hbm [shape: bf16[128,128], index: 6, kind: input, shape index: {}]   ;;  %s3296_s7 = inlined_call_operand.vmem [shape: f32[1,128], index: 7, kind: input, shape index: {}]   ;;  %s3297_s8 = inlined_call_operand.hbm [shape: bf16[128,128], index: 8, kind: input, shape index: {}]   ;;  %s3298_s9 = inlined_call_operand.hbm [shape: bf16[128,128], index: 9, kind: input, shape index: {}]   ;;  %s3299_s10 = inlined_call_operand.vmem [shape: f32[1,128], index: 10, kind: input, shape index: {}]   ;;  %s3300_s11 = inlined_call_operand.hbm [shape: bf16[128,128], index: 11, kind: input, shape index: {}]   ;;  %s3301_s12 = inlined_call_operand.vmem [shape: f32[1,128], index: 12, kind: input, shape index: {}]   ;;  %s3302_s13 = inlined_call_operand.hbm [shape: bf16[128,128], index: 13, kind: output, shape index: {}]  }
   0x1   :  { %19 = vsyncpa [#allocation9], 0 }
   0x2   :  { %20 = vsyncpa [#allocation12], 0 }
   0x3   :  { %21 = vsyncpa [#allocation15], 0 }
   0x4   :  { %22 = vsyncpa [#allocation18], 0  ;;  %s44_s27 = sshll.u32 %s3291_s2, 4  ;;  %s45_s27 = int_to_ptr.hbm [resolvable:$true] %s44_s27 }
   0x5   :  { %23 = vsyncpa [#allocation7], 0  ;;  %s2851_s28 = smov [#allocation8]   ;;  %s69_s15 = sshll.u32 %s3294_s5, 4  ;;  %s70_s15 = int_to_ptr.hbm [resolvable:$true] %s69_s15 }
   0x6   :  { %s46_s29 = sshll.u32 %s2851_s28, 4  ;;  %s2852_s16 = smov [#allocation11]   ;;  %s47_s29 = int_to_ptr.vmem [resolvable:$true] %s46_s29 }
   0x7   :  { %49 = dma.hbm_to_vmem [thread:$0]  %s45_s27, 128, %s47_s29, [#allocation9]  }
   0x8   :  { %s71_s17 = sshll.u32 %s2852_s16, 4  ;;  %s97_s20 = sshll.u32 %s3297_s8, 4  ;;  %s72_s17 = int_to_ptr.vmem [resolvable:$true] %s71_s17  ;;  %s98_s20 = int_to_ptr.hbm [resolvable:$true] %s97_s20 }
   0x9   :  { %s2853_s2 = smov 64   ;;  %s2854_s21 = smov 4  }
   0xa   :  { %77 = dma.hbm_to_vmem [thread:$0]  %s70_s15, 1024, %s72_s17, [#allocation12], %s2853_s2, %s2853_s2, %s2854_s21  }
   0xb   :  { %s28_s24 = sshll.u32 %s3289_s0, 4  ;;  %s2855_s5 = smov [#allocation14]   ;;  %s29_s24 = int_to_ptr.hbm [resolvable:$true] %s28_s24 }
   0xc   :  { %s99_s25 = sshll.u32 %s2855_s5, 4  ;;  %s2856_s8 = smov [#allocation5]   ;;  %s100_s25 = int_to_ptr.vmem [resolvable:$true] %s99_s25 }
   0xd   :  { %105 = dma.hbm_to_vmem [thread:$0]  %s98_s20, 1024, %s100_s25, [#allocation15], %s2853_s2, %s2853_s2, %s2854_s21  }
   0xe   :  { %s30_s26 = sshll.u32 %s2856_s8, 4  ;;  %s56_s29 = sshll.u32 %s3293_s4, 4  ;;  %s31_s26 = int_to_ptr.vmem [resolvable:$true] %s30_s26  ;;  %s57_s29 = int_to_ptr.hbm [resolvable:$true] %s56_s29 }
   0xf   :  { %36 = dma.hbm_to_vmem [thread:$0]  %s29_s24, 1024, %s31_s26, [#allocation6], %s2853_s2, %s2853_s2, %s2854_s21  }
  0x10   :  { %s82_s14 = sshll.u32 %s3295_s6, 4  ;;  %s2857_s15 = smov [#allocation10]   ;;  %s83_s14 = int_to_ptr.hbm [resolvable:$true] %s82_s14 }
  0x11   :  { %s58_s16 = sshll.u32 %s2857_s15, 4  ;;  %s2858_s17 = smov [#allocation13]   ;;  %s59_s16 = int_to_ptr.vmem [resolvable:$true] %s58_s16 }
  0x12   :  { %64 = dma.hbm_to_vmem [thread:$0]  %s57_s29, 1024, %s59_s16, [#allocation9], %s2853_s2, %s2853_s2, %s2854_s21  }
  0x13   :  { %s84_s4 = sshll.u32 %s2858_s17, 4  ;;  %s110_s20 = sshll.u32 %s3298_s9, 4  ;;  %s85_s4 = int_to_ptr.vmem [resolvable:$true] %s84_s4  ;;  %s111_s20 = int_to_ptr.hbm [resolvable:$true] %s110_s20 }
  0x14   :  { %90 = dma.hbm_to_vmem [thread:$0]  %s83_s14, 1024, %s85_s4, [#allocation12], %s2853_s2, %s2853_s2, %s2854_s21  }
  0x15   :  { %s125_s23 = sshll.u32 %s3300_s11, 4  ;;  %s2859_s24 = smov [#allocation16]   ;;  %s126_s23 = int_to_ptr.hbm [resolvable:$true] %s125_s23 }
  0x16   :  { %s112_s5 = sshll.u32 %s2859_s24, 4  ;;  %s2860_s25 = smov [#allocation17]   ;;  %s113_s5 = int_to_ptr.vmem [resolvable:$true] %s112_s5 }
  0x17   :  { %118 = dma.hbm_to_vmem [thread:$0]  %s111_s20, 1024, %s113_s5, [#allocation15], %s2853_s2, %s2853_s2, %s2854_s21  }
  0x18   :  { %s127_s9 = sshll.u32 %s2860_s25, 4  ;;  %s128_s9 = int_to_ptr.vmem [resolvable:$true] %s127_s9 }
  0x19   :  { %133 = dma.hbm_to_vmem [thread:$0]  %s126_s23, 1024, %s128_s9, [#allocation18], %s2853_s2, %s2853_s2, %s2854_s21  }
  0x1a   :  { %2839 = dma.done.wait [#allocation6], 1024  }
  0x1b   :  { %2840 = vsyncadd [#allocation6], 4294966272 }
  0x1c   :  { %2841 = dma.done.wait [#allocation9], 1152  }
  0x1d   :  { %2842 = vsyncadd [#allocation9], 4294966144 }
  0x1e   :  { %2843 = dma.done.wait [#allocation12], 2048  }
  0x1f   :  { %2844 = vsyncadd [#allocation12], 4294965248 }
  0x20   :  { %2845 = dma.done.wait [#allocation15], 2048  }
  0x21   :  { %2846 = vsyncadd [#allocation15], 4294965248 }
  0x22   :  { %2847 = dma.done.wait [#allocation18], 1024  }
  0x23   :  { %2848 = vsyncadd [#allocation18], 4294966272  ;;  %v2254_v0 = vld [vmem:[#allocation10 + $0x38] sm:$0xff]  ;;  %v2253_v1 = vld [vmem:[#allocation10 + $0x30] sm:$0xff]  ;;  %v659_v61 = vlaneseq  ;;  %s1854_s9 = sshll.u32 %s3302_s13, 4  ;;  %s1855_s9 = int_to_ptr.hbm [resolvable:$true] %s1854_s9 }
  0x24   :  { %2460 = vmatpush.bf16.msra.mxu1 %v2254_v0  ;;  %2462 = vmatpush.bf16.msra.mxu3 %v2254_v0  ;;  %v2252_v2 = vld [vmem:[#allocation10 + $0x28] sm:$0xff]  ;;  %v2251_v3 = vld [vmem:[#allocation10 + $0x20] sm:$0xff]  ;;  %v2250_v4 = vld [vmem:[#allocation10 + $0x18] sm:$0xff] }
  0x25   :  { %2461 = vmatpush.bf16.msra.mxu2 %v2254_v0  ;;  %300 = vmatpush.bf16.msra.mxu0 %v2254_v0  ;;  %v2249_v5 = vld [vmem:[#allocation10 + $0x10] sm:$0xff]  ;;  %v2248_v6 = vld [vmem:[#allocation10 + $0x8] sm:$0xff]  ;;  %v2247_v7 = vld [vmem:[#allocation10] sm:$0xff]  ;;  %v2981_v62 = vshrl.u32 %v659_v61, 7 }
  0x26   :  { %v2262_v8 = vld [vmem:[#allocation11 + $0x38] sm:$0xff]  ;;  %v2241_v9 = vld [vmem:[#allocation5 + $0x10] sm:$0xff]  ;;  %v2261_v12 = vld [vmem:[#allocation11 + $0x30] sm:$0xff] }
  0x27   :  { %v2245_v10 = vld [vmem:[#allocation5 + $0x30] sm:$0xff]  ;;  %v2243_v11 = vld [vmem:[#allocation5 + $0x20] sm:$0xff]  ;;  %v2259_v15 = vld [vmem:[#allocation11 + $0x20] sm:$0xff] }
  0x28   :  { %2463 = vmatpush.bf16.msra.mxu1 %v2253_v1  ;;  %2465 = vmatpush.bf16.msra.mxu3 %v2253_v1  ;;  %v2239_v13 = vld [vmem:[#allocation5] sm:$0xff]  ;;  %v2260_v14 = vld [vmem:[#allocation11 + $0x28] sm:$0xff]  ;;  %v2242_v17 = vld [vmem:[#allocation5 + $0x18] sm:$0xff] }
  0x29   :  { %2464 = vmatpush.bf16.msra.mxu2 %v2253_v1  ;;  %301 = vmatpush.bf16.msra.mxu0 %v2253_v1  ;;  %v2258_v16 = vld [vmem:[#allocation11 + $0x18] sm:$0xff]  ;;  %v2246_v18 = vld [vmem:[#allocation5 + $0x38] sm:$0xff]  ;;  %v2244_v19 = vld [vmem:[#allocation5 + $0x28] sm:$0xff]  ;;  %v674_v1 = vadd.s32 112, %v2981_v62 }
  0x2a   :  { %v2257_v20 = vld [vmem:[#allocation11 + $0x10] sm:$0xff]  ;;  %v2240_v21 = vld [vmem:[#allocation5 + $0x8] sm:$0xff]  ;;  %v2256_v22 = vld [vmem:[#allocation11 + $0x8] sm:$0xff] }
  0x2b   :  { %v2255_v23 = vld [vmem:[#allocation11] sm:$0xff]  ;;  %v658_v63 = vld [vmem:[#allocation8] sm:$0xff] }
  0x2c   :  { %2466 = vmatpush.bf16.msra.mxu1 %v2252_v2  ;;  %2468 = vmatpush.bf16.msra.mxu3 %v2252_v2 }
  0x2d   :  { %2467 = vmatpush.bf16.msra.mxu2 %v2252_v2  ;;  %302 = vmatpush.bf16.msra.mxu0 %v2252_v2  ;;  %v675_v2 = vadd.s32 120, %v2981_v62 }
  0x30   :  { %2469 = vmatpush.bf16.msra.mxu1 %v2251_v3  ;;  %2471 = vmatpush.bf16.msra.mxu3 %v2251_v3 }
  0x31   :  { %2470 = vmatpush.bf16.msra.mxu2 %v2251_v3  ;;  %303 = vmatpush.bf16.msra.mxu0 %v2251_v3  ;;  %v2985_v3 = vperm.slane %v658_v63, 1 }
  0x33   :  { %vm748_vm0 = vcmp.eq.s32.totalorder %v674_v1, %v2985_v3  ;;  %vm749_vm1 = vcmp.eq.s32.totalorder %v675_v2, %v2985_v3 }
  0x34   :  { %2472 = vmatpush.bf16.msra.mxu1 %v2250_v4  ;;  %2474 = vmatpush.bf16.msra.mxu3 %v2250_v4  ;;  %vm2991_vm2 = vmpackc.low %vm749_vm1, %vm748_vm0 }
  0x35   :  { %2473 = vmatpush.bf16.msra.mxu2 %v2250_v4  ;;  %304 = vmatpush.bf16.msra.mxu0 %v2250_v4  ;;  %v2987_v4 = vperm.slane %v658_v63, 0 }
  0x37   :  { %vm691_vm3 = vcmp.eq.s32.totalorder %v674_v1, %v2987_v4  ;;  %vm692_vm4 = vcmp.eq.s32.totalorder %v675_v2, %v2987_v4 }
  0x38   :  { %2475 = vmatpush.bf16.msra.mxu1 %v2249_v5  ;;  %2477 = vmatpush.bf16.msra.mxu3 %v2249_v5  ;;  %vm2556_vm5 = vmpackc.low %vm692_vm4, %vm691_vm3 }
  0x39   :  { %2476 = vmatpush.bf16.msra.mxu2 %v2249_v5  ;;  %305 = vmatpush.bf16.msra.mxu0 %v2249_v5 }
  0x3c   :  { %2478 = vmatpush.bf16.msra.mxu1 %v2248_v6  ;;  %2480 = vmatpush.bf16.msra.mxu3 %v2248_v6 }
  0x3d   :  { %2479 = vmatpush.bf16.msra.mxu2 %v2248_v6  ;;  %306 = vmatpush.bf16.msra.mxu0 %v2248_v6 }
  0x40   :  { %2481 = vmatpush.bf16.msra.mxu1 %v2247_v7  ;;  %2483 = vmatpush.bf16.msra.mxu3 %v2247_v7 }
  0x41   :  { %2482 = vmatpush.bf16.msra.mxu2 %v2247_v7  ;;  %307 = vmatpush.bf16.msra.mxu0 %v2247_v7 }
  0x43   :  { %318 = vmatmul.bf16.vlgmr.msra.gmra.mxu1 %v2241_v9  ;;  %338 = vmatmul.bf16.vlgmr.msra.gmra.mxu3 %v2245_v10 }
  0x44   :  { %445 = vmatpush.bf16.msrb.mxu1 %v2262_v8  ;;  %328 = vmatmul.bf16.vlgmr.msra.gmra.mxu2 %v2243_v11  ;;  %v2861_v8 = vmov 1.0|1.0  }
  0x45   :  { %308 = vmatmul.bf16.vlgmr.msra.gmra.mxu0 %v2239_v13  ;;  %2541 = vmatpush.lsf.msk.bf16.msk.msrb.mxu2 %vm2991_vm2, %v2861_v8 }
  0x48   :  { %446 = vmatpush.bf16.msrb.mxu1 %v2261_v12 }
  0x4c   :  { %447 = vmatpush.bf16.msrb.mxu1 %v2260_v14  ;;  %v671_v14 = vadd.s32 88, %v2981_v62 }
  0x4e   :  { %vm745_vm13 = vcmp.eq.s32.totalorder %v671_v14, %v2985_v3  ;;  %vm688_vm15 = vcmp.eq.s32.totalorder %v671_v14, %v2987_v4 }
  0x50   :  { %448 = vmatpush.bf16.msrb.mxu1 %v2259_v15 }
  0x53   :  { %323 = vmatmul.bf16.gmra.mxu1 %v2242_v17  ;;  %343 = vmatmul.bf16.gmra.mxu3 %v2246_v18 }
  0x54   :  { %449 = vmatpush.bf16.msrb.mxu1 %v2258_v16  ;;  %333 = vmatmul.bf16.gmra.mxu2 %v2244_v19 }
  0x55   :  { %313 = vmatmul.bf16.gmra.mxu0 %v2240_v21 }
  0x58   :  { %450 = vmatpush.bf16.msrb.mxu1 %v2257_v20  ;;  %v2307_v20 = vld [vmem:[#allocation16 + $0x20] sm:$0xff] }
  0x5c   :  { %451 = vmatpush.bf16.msrb.mxu1 %v2256_v22  ;;  %v666_v22 = vadd.s32 48, %v2981_v62 }
  0x60   :  { %452 = vmatpush.bf16.msrb.mxu1 %v2255_v23  ;;  %v667_v23 = vadd.s32 56, %v2981_v62 }
  0x63   :  { %453 = vmatmul.bf16.vlgmr.msrb.gmra.mxu1 %v2239_v13  ;;  %v670_v13 = vadd.s32 80, %v2981_v62 }
  0x65   :  { %vm744_vm12 = vcmp.eq.s32.totalorder %v670_v13, %v2985_v3  ;;  %vm687_vm14 = vcmp.eq.s32.totalorder %v670_v13, %v2987_v4 }
  0x66   :  { %vm3021_vm0 = vmpackc.low %vm745_vm13, %vm744_vm12  ;;  %vm683_vm12 = vcmp.eq.s32.totalorder %v666_v22, %v2987_v4  ;;  %vm684_vm13 = vcmp.eq.s32.totalorder %v667_v23, %v2987_v4 }
  0x67   :  { %vm2560_vm1 = vmpackc.low %vm688_vm15, %vm687_vm14 }
  0x68   :  { %vm2564_vm15 = vmpackc.low %vm684_vm13, %vm683_vm12 }
  0x73   :  { %458 = vmatmul.bf16.gmra.mxu1 %v2240_v21 }
  0x83   :  { %463 = vmatmul.bf16.gmra.mxu1 %v2241_v9  ;;  %v672_v9 = vadd.s32 96, %v2981_v62 }
  0x85   :  { %vm746_vm6 = vcmp.eq.s32.totalorder %v672_v9, %v2985_v3  ;;  %vm689_vm8 = vcmp.eq.s32.totalorder %v672_v9, %v2987_v4 }
  0x93   :  { %468 = vmatmul.bf16.gmra.mxu1 %v2242_v17  ;;  %v2287_v17 = vld [vmem:[#allocation5] sm:$0xff] }
  0xa3   :  { %473 = vmatmul.bf16.gmra.mxu1 %v2243_v11  ;;  %v2289_v11 = vld [vmem:[#allocation5 + $0x10] sm:$0xff] }
  0xb3   :  { %478 = vmatmul.bf16.gmra.mxu1 %v2244_v19  ;;  %v669_v19 = vadd.s32 72, %v2981_v62 }
  0xb5   :  { %vm743_vm4 = vcmp.eq.s32.totalorder %v669_v19, %v2985_v3 }
  0xc0   :  { %v319_v24 = vpop.f32.mrf.mxu1 }
  0xc2   :  { %v309_v60 = vpop.f32.mrf.mxu0 }
  0xc3   :  { %483 = vmatmul.bf16.gmra.mxu1 %v2245_v10  ;;  %v673_v10 = vadd.s32 104, %v2981_v62 }
  0xc5   :  { %vm747_vm7 = vcmp.eq.s32.totalorder %v673_v10, %v2985_v3  ;;  %vm690_vm9 = vcmp.eq.s32.totalorder %v673_v10, %v2987_v4 }
  0xc6   :  { %v339_v25 = vpop.f32.mrf.mxu3  ;;  %vm3007_vm10 = vmpackc.low %vm747_vm7, %vm746_vm6  ;;  %vm686_vm6 = vcmp.eq.s32.totalorder %v669_v19, %v2987_v4 }
  0xc7   :  { %v329_v26 = vpop.f32.mrf.mxu2  ;;  %2543 = vmatpush.lsf.msk.bf16.msk.msrb.mxu2 %vm3007_vm10, %v2861_v8  ;;  %vm2558_vm11 = vmpackc.low %vm690_vm9, %vm689_vm8  ;;  %vm740_vm9 = vcmp.eq.s32.totalorder %v666_v22, %v2985_v3 }
  0xc8   :  { %v321_v27 = vpop.f32.mrf.mxu1 }
  0xc9   :  { %v2332_v28 = vpack.c.bf16 %v321_v27, %v319_v24  ;;  %v664_v27 = vadd.s32 32, %v2981_v62 }
  0xca   :  { %v311_v5 = vpop.f32.mrf.mxu0 }
  0xcb   :  { %2440 = vst [vmem:[#allocation3 + $0x18] sm:$0xff] %v2332_v28   ;;  %v2322_v7 = vpack.c.bf16 %v311_v5, %v309_v60  ;;  %2545 = vmatpush.lsf.msk.bf16.msk.msrb.mxu2 %vm3021_vm0, %v2861_v8  ;;  %v665_v28 = vadd.s32 40, %v2981_v62  ;;  %v2280_v60 = vld [vmem:[#allocation13 + $0x8] sm:$0xff]  ;;  %v1049_v5 = vld [vmem:[%s3290_s1 + $0x8] sm:$0xff] }
  0xcd   :  { %2323 = vst [vmem:[#allocation3 + $0x30] sm:$0xff] %v2322_v7  }
  0xce   :  { %v341_v29 = vpop.f32.mrf.mxu3 }
  0xcf   :  { %v2352_v30 = vpack.c.bf16 %v341_v29, %v339_v25  ;;  %v331_v31 = vpop.f32.mrf.mxu2  ;;  %v2301_v29 = vld [vmem:[#allocation14 + $0x30] sm:$0xff]  ;;  %v2308_v25 = vld [vmem:[#allocation16 + $0x28] sm:$0xff] }
  0xd0   :  { %v324_v32 = vpop.f32.mrf.mxu1  ;;  %v2342_v33 = vpack.c.bf16 %v331_v31, %v329_v26  ;;  %v662_v31 = vadd.s32 16, %v2981_v62 }
  0xd1   :  { %2444 = vst [vmem:[#allocation3 + $0x28] sm:$0xff] %v2352_v30  }
  0xd2   :  { %2442 = vst [vmem:[#allocation3 + $0x8] sm:$0xff] %v2342_v33   ;;  %v2265_v53 = vld [vmem:[#allocation3 + $0x18] sm:$0xff]  ;;  %v314_v16 = vpop.f32.mrf.mxu0  ;;  %vm679_vm12 = vcmp.eq.s32.totalorder %v662_v31, %v2987_v4 }
  0xd3   :  { %488 = vmatmul.bf16.gmra.mxu1 %v2246_v18  ;;  %v668_v18 = vadd.s32 64, %v2981_v62 }
  0xd5   :  { %vm742_vm3 = vcmp.eq.s32.totalorder %v668_v18, %v2985_v3 }
  0xd6   :  { %v344_v34 = vpop.f32.mrf.mxu3  ;;  %vm3035_vm7 = vmpackc.low %vm743_vm4, %vm742_vm3  ;;  %vm739_vm3 = vcmp.eq.s32.totalorder %v665_v28, %v2985_v3  ;;  %vm681_vm4 = vcmp.eq.s32.totalorder %v664_v27, %v2987_v4 }
  0xd7   :  { %v334_v35 = vpop.f32.mrf.mxu2  ;;  %2547 = vmatpush.lsf.msk.bf16.msk.msrb.mxu2 %vm3035_vm7, %v2861_v8 }
  0xd8   :  { %v326_v36 = vpop.f32.mrf.mxu1  ;;  %v2269_v46 = vld [vmem:[#allocation3 + $0x28] sm:$0xff] }
  0xd9   :  { %v2337_v37 = vpack.c.bf16 %v326_v36, %v324_v32  ;;  %v2267_v49 = vld [vmem:[#allocation3 + $0x8] sm:$0xff]  ;;  %v663_v32 = vadd.s32 24, %v2981_v62 }
  0xda   :  { %v316_v24 = vpop.f32.mrf.mxu0 }
  0xdb   :  { %2441 = vst [vmem:[#allocation3 + $0x10] sm:$0xff] %v2337_v37   ;;  %v2327_v26 = vpack.c.bf16 %v316_v24, %v314_v16  ;;  %vm680_vm13 = vcmp.eq.s32.totalorder %v663_v32, %v2987_v4  ;;  %v537_v37 = vld [vmem:[%s3292_s3 + $0x58] sm:$0xff] }
  0xdd   :  { %2439 = vst [vmem:[#allocation3] sm:$0xff] %v2327_v26  }
  0xde   :  { %v346_v38 = vpop.f32.mrf.mxu3 }
  0xdf   :  { %v2357_v39 = vpack.c.bf16 %v346_v38, %v344_v34  ;;  %v336_v40 = vpop.f32.mrf.mxu2  ;;  %v2310_v34 = vld [vmem:[#allocation16 + $0x38] sm:$0xff] }
  0xe0   :  { %v454_v41 = vpop.f32.mrf.mxu1  ;;  %v2347_v42 = vpack.c.bf16 %v336_v40, %v334_v35  ;;  %v661_v35 = vadd.s32 8, %v2981_v62 }
  0xe1   :  { %2445 = vst [vmem:[#allocation3 + $0x38] sm:$0xff] %v2357_v39   ;;  %v2263_v39 = vld [vmem:[#allocation3 + $0x30] sm:$0xff] }
  0xe2   :  { %2443 = vst [vmem:[#allocation3 + $0x20] sm:$0xff] %v2347_v42   ;;  %v2266_v51 = vld [vmem:[#allocation3 + $0x10] sm:$0xff] }
  0xe4   :  { %v2264_v36 = vld [vmem:[#allocation3] sm:$0xff] }
  0xe8   :  { %v456_v43 = vpop.f32.mrf.mxu1  ;;  %v2270_v44 = vld [vmem:[#allocation3 + $0x38] sm:$0xff] }
  0xe9   :  { %v2362_v45 = vpack.c.bf16 %v456_v43, %v454_v41  ;;  %999 = vmatpush.bf16.msra.mxu3 %v2270_v44  ;;  %v2268_v47 = vld [vmem:[#allocation3 + $0x20] sm:$0xff] }
  0xeb   :  { %2363 = vst [vmem:[#allocation4] sm:$0xff] %v2362_v45  }
  0xed   :  { %1000 = vmatpush.bf16.msra.mxu3 %v2269_v46 }
  0xf0   :  { %v459_v48 = vpop.f32.mrf.mxu1 }
  0xf1   :  { %1001 = vmatpush.bf16.msra.mxu3 %v2268_v47 }
  0xf5   :  { %1002 = vmatpush.bf16.msra.mxu3 %v2267_v49 }
  0xf8   :  { %v461_v50 = vpop.f32.mrf.mxu1 }
  0xf9   :  { %v2367_v52 = vpack.c.bf16 %v461_v50, %v459_v48  ;;  %1003 = vmatpush.bf16.msra.mxu3 %v2266_v51 }
  0xfb   :  { %2446 = vst [vmem:[#allocation4 + $0x18] sm:$0xff] %v2367_v52   ;;  %v2271_v52 = vld [vmem:[#allocation4] sm:$0xff] }
  0xfd   :  { %1004 = vmatpush.bf16.msra.mxu3 %v2265_v53  ;;  %v2286_v53 = vld [vmem:[#allocation13 + $0x38] sm:$0xff] }
  0xfe   :  { %1168 = vmatpush.bf16.msrb.mxu0 %v2286_v53 }
 0x100   :  { %v464_v54 = vpop.f32.mrf.mxu1 }
 0x101   :  { %2557 = vmatpush.lsf.msk.bf16.msk.msrb.mxu3 %vm2556_vm5, %v2861_v8  ;;  %vm685_vm5 = vcmp.eq.s32.totalorder %v668_v18, %v2987_v4 }
 0x102   :  { %vm2562_vm8 = vmpackc.low %vm686_vm6, %vm685_vm5  ;;  %vm682_vm5 = vcmp.eq.s32.totalorder %v665_v28, %v2987_v4  ;;  %v2272_v51 = vld [vmem:[#allocation4 + $0x18] sm:$0xff] }
 0x105   :  { %2559 = vmatpush.lsf.msk.bf16.msk.msrb.mxu3 %vm2558_vm11, %v2861_v8  ;;  %vm741_vm11 = vcmp.eq.s32.totalorder %v667_v23, %v2985_v3  ;;  %v1051_v23 = vld [vmem:[%s3290_s1 + $0x18] sm:$0xff] }
 0x106   :  { %vm3049_vm14 = vmpackc.low %vm741_vm11, %vm740_vm9  ;;  %vm736_vm9 = vcmp.eq.s32.totalorder %v662_v31, %v2985_v3  ;;  %vm737_vm11 = vcmp.eq.s32.totalorder %v663_v32, %v2985_v3 }
 0x107   :  { %2549 = vmatpush.lsf.msk.bf16.msk.msrb.mxu2 %vm3049_vm14, %v2861_v8 }
 0x108   :  { %v466_v55 = vpop.f32.mrf.mxu1 }
 0x109   :  { %v2372_v56 = vpack.c.bf16 %v466_v55, %v464_v54  ;;  %2561 = vmatpush.lsf.msk.bf16.msk.msrb.mxu3 %vm2560_vm1, %v2861_v8  ;;  %vm738_vm1 = vcmp.eq.s32.totalorder %v664_v27, %v2985_v3  ;;  %v2285_v54 = vld [vmem:[#allocation13 + $0x30] sm:$0xff]  ;;  %v2284_v55 = vld [vmem:[#allocation13 + $0x28] sm:$0xff] }
 0x10a   :  { %vm3063_vm6 = vmpackc.low %vm739_vm3, %vm738_vm1  ;;  %vm734_vm1 = vcmp.eq.s32.totalorder %v2981_v62, %v2985_v3  ;;  %1169 = vmatpush.bf16.msrb.mxu0 %v2285_v54 }
 0x10b   :  { %2447 = vst [vmem:[#allocation4 + $0x10] sm:$0xff] %v2372_v56   ;;  %2551 = vmatpush.lsf.msk.bf16.msk.msrb.mxu2 %vm3063_vm6, %v2861_v8  ;;  %vm2568_vm3 = vmpackc.low %vm680_vm13, %vm679_vm12  ;;  %v2283_v56 = vld [vmem:[#allocation13 + $0x20] sm:$0xff] }
 0x10d   :  { %2563 = vmatpush.lsf.msk.bf16.msk.msrb.mxu3 %vm2562_vm8, %v2861_v8  ;;  %vm2566_vm8 = vmpackc.low %vm682_vm5, %vm681_vm4  ;;  %vm677_vm4 = vcmp.eq.s32.totalorder %v2981_v62, %v2987_v4  ;;  %vm735_vm5 = vcmp.eq.s32.totalorder %v661_v35, %v2985_v3  ;;  %v2279_v62 = vld [vmem:[#allocation13] sm:$0xff]  ;;  %v1048_v3 = vld [vmem:[%s3290_s1] sm:$0xff] }
 0x10e   :  { %1170 = vmatpush.bf16.msrb.mxu0 %v2284_v55 }
 0x110   :  { %v469_v57 = vpop.f32.mrf.mxu1 }
 0x111   :  { %2565 = vmatpush.lsf.msk.bf16.msk.msrb.mxu3 %vm2564_vm15, %v2861_v8  ;;  %vm3077_vm15 = vmpackc.low %vm737_vm11, %vm736_vm9 }
 0x112   :  { %2553 = vmatpush.lsf.msk.bf16.msk.msrb.mxu2 %vm3077_vm15, %v2861_v8  ;;  %vm3092_vm9 = vmpackc.low %vm735_vm5, %vm734_vm1  ;;  %v2273_v50 = vld [vmem:[#allocation4 + $0x10] sm:$0xff]  ;;  %1171 = vmatpush.bf16.msrb.mxu0 %v2283_v56 }
 0x115   :  { %2567 = vmatpush.lsf.msk.bf16.msk.msrb.mxu3 %vm2566_vm8, %v2861_v8  ;;  %vm678_vm8 = vcmp.eq.s32.totalorder %v661_v35, %v2987_v4 }
 0x116   :  { %vm2570_vm11 = vmpackc.low %vm678_vm8, %vm677_vm4  ;;  %2555 = vmatpush.lsf.msk.bf16.msk.msrb.mxu2 %vm3092_vm9, %v2861_v8 }
 0x118   :  { %v471_v58 = vpop.f32.mrf.mxu1  ;;  %2495 = vllmr.16.mxu2 }
 0x119   :  { %v2377_v59 = vpack.c.bf16 %v471_v58, %v469_v57  ;;  %2569 = vmatpush.lsf.msk.bf16.msk.msrb.mxu3 %vm2568_vm3, %v2861_v8  ;;  %v2282_v57 = vld [vmem:[#allocation13 + $0x18] sm:$0xff] }
 0x11a   :  { %1172 = vmatpush.bf16.msrb.mxu0 %v2282_v57 }
 0x11b   :  { %2448 = vst [vmem:[#allocation4 + $0x20] sm:$0xff] %v2377_v59   ;;  %v2281_v59 = vld [vmem:[#allocation13 + $0x10] sm:$0xff] }
 0x11d   :  { %1005 = vmatpush.bf16.msra.mxu3 %v2264_v36  ;;  %v1052_v36 = vld [vmem:[%s3290_s1 + $0x20] sm:$0xff] }
 0x11e   :  { %1173 = vmatpush.bf16.msrb.mxu0 %v2281_v59 }
 0x120   :  { %v474_v0 = vpop.f32.mrf.mxu1 }
 0x121   :  { %2571 = vmatpush.lsf.msk.bf16.msk.msrb.mxu3 %vm2570_vm11, %v2861_v8 }
 0x122   :  { %v2274_v49 = vld [vmem:[#allocation4 + $0x20] sm:$0xff]  ;;  %1174 = vmatpush.bf16.msrb.mxu0 %v2280_v60 }
 0x123   :  { %2523 = vllmr.16.mxu3 }
 0x125   :  { %1006 = vmatpush.bf16.msra.mxu3 %v2263_v39 }
 0x126   :  { %1175 = vmatpush.bf16.msrb.mxu0 %v2279_v62 }
 0x128   :  { %v476_v12 = vpop.f32.mrf.mxu1 }
 0x129   :  { %v2382_v15 = vpack.c.bf16 %v476_v12, %v474_v0 }
 0x12b   :  { %2449 = vst [vmem:[#allocation4 + $0x28] sm:$0xff] %v2382_v15  }
 0x130   :  { %v479_v21 = vpop.f32.mrf.mxu1 }
 0x132   :  { %v2275_v48 = vld [vmem:[#allocation4 + $0x28] sm:$0xff] }
 0x138   :  { %v481_v30 = vpop.f32.mrf.mxu1 }
 0x139   :  { %v2387_v33 = vpack.c.bf16 %v481_v30, %v479_v21  ;;  %v1050_v21 = vld [vmem:[%s3290_s1 + $0x10] sm:$0xff] }
 0x13b   :  { %2450 = vst [vmem:[#allocation4 + $0x8] sm:$0xff] %v2387_v33  }
 0x140   :  { %v484_v38 = vpop.f32.mrf.mxu1 }
 0x142   :  { %v2276_v47 = vld [vmem:[#allocation4 + $0x8] sm:$0xff] }
 0x144   :  { %2524 = vmatmul.lmr.bf16.vlgmr.msra.gmra.16.mxu3 }
 0x148   :  { %v486_v40 = vpop.f32.mrf.mxu1 }
 0x149   :  { %v2392_v41 = vpack.c.bf16 %v486_v40, %v484_v38  ;;  %v1053_v40 = vld [vmem:[%s3290_s1 + $0x28] sm:$0xff] }
 0x14b   :  { %2451 = vst [vmem:[#allocation4 + $0x30] sm:$0xff] %v2392_v41  }
 0x14c   :  { %2525 = vmatmul.lmr.bf16.gmra.16.mxu3 }
 0x150   :  { %v489_v42 = vpop.f32.mrf.mxu1 }
 0x152   :  { %v2277_v46 = vld [vmem:[#allocation4 + $0x30] sm:$0xff] }
 0x154   :  { %2526 = vmatmul.lmr.bf16.gmra.16.mxu3 }
 0x158   :  { %v491_v43 = vpop.f32.mrf.mxu1 }
 0x159   :  { %v2397_v44 = vpack.c.bf16 %v491_v43, %v489_v42 }
 0x15b   :  { %2452 = vst [vmem:[#allocation4 + $0x38] sm:$0xff] %v2397_v44  }
 0x15c   :  { %2527 = vmatmul.lmr.bf16.gmra.16.mxu3 }
 0x162   :  { %v2278_v45 = vld [vmem:[#allocation4 + $0x38] sm:$0xff] }
 0x163   :  { %886 = vmatpush.bf16.msra.mxu2 %v2278_v45 }
 0x164   :  { %2528 = vmatmul.lmr.bf16.gmra.16.mxu3 }
 0x167   :  { %887 = vmatpush.bf16.msra.mxu2 %v2277_v46 }
 0x16b   :  { %888 = vmatpush.bf16.msra.mxu2 %v2276_v47 }
 0x16c   :  { %2529 = vmatmul.lmr.bf16.gmra.16.mxu3 }
 0x16f   :  { %889 = vmatpush.bf16.msra.mxu2 %v2275_v48 }
 0x173   :  { %890 = vmatpush.bf16.msra.mxu2 %v2274_v49 }
 0x174   :  { %2530 = vmatmul.lmr.bf16.gmra.16.mxu3 }
 0x177   :  { %891 = vmatpush.bf16.msra.mxu2 %v2273_v50  ;;  %v1054_v50 = vld [vmem:[%s3290_s1 + $0x30] sm:$0xff] }
 0x17b   :  { %892 = vmatpush.bf16.msra.mxu2 %v2272_v51 }
 0x17c   :  { %2531 = vmatmul.lmr.bf16.gmra.16.mxu3 }
 0x17f   :  { %893 = vmatpush.bf16.msra.mxu2 %v2271_v52  ;;  %v1055_v52 = vld [vmem:[%s3290_s1 + $0x38] sm:$0xff] }
 0x182   :  { %2496 = vmatmul.lmr.bf16.vlgmr.msra.gmra.16.mxu2 }
 0x183   :  { %1445 = vmatpush.bf16.msra.mxu2 %v2310_v34 }
 0x184   :  { %2532 = vmatmul.lmr.bf16.gmra.16.mxu3 }
 0x18a   :  { %2497 = vmatmul.lmr.bf16.gmra.16.mxu2 }
 0x18c   :  { %2533 = vmatmul.lmr.bf16.gmra.16.mxu3 }
 0x192   :  { %2498 = vmatmul.lmr.bf16.gmra.16.mxu2 }
 0x194   :  { %2534 = vmatmul.lmr.bf16.gmra.16.mxu3 }
 0x19a   :  { %2499 = vmatmul.lmr.bf16.gmra.16.mxu2 }
 0x19c   :  { %2535 = vmatmul.lmr.bf16.gmra.16.mxu3 }
 0x1a2   :  { %2500 = vmatmul.lmr.bf16.gmra.16.mxu2 }
 0x1a4   :  { %2536 = vmatmul.lmr.bf16.gmra.16.mxu3 }
 0x1aa   :  { %2501 = vmatmul.lmr.bf16.gmra.16.mxu2 }
 0x1ac   :  { %2537 = vmatmul.lmr.bf16.gmra.16.mxu3 }
 0x1b2   :  { %2502 = vmatmul.lmr.bf16.gmra.16.mxu2 }
 0x1b4   :  { %2538 = vmatmul.lmr.bf16.gmra.16.mxu3 }
 0x1ba   :  { %2503 = vmatmul.lmr.bf16.gmra.16.mxu2 }
 0x1bc   :  { %2539 = vmatmul.lmr.bf16.gmra.16.mxu3 }
 0x1c2   :  { %2504 = vmatmul.lmr.bf16.gmra.16.mxu2 }
 0x1c7   :  { %v1008_v58 = vpop.f32.mrf.mxu3 }
 0x1ca   :  { %2505 = vmatmul.lmr.bf16.gmra.16.mxu2 }
 0x1cf   :  { %v1010_v61 = vpop.f32.mrf.mxu3 }
 0x1d2   :  { %2506 = vmatmul.lmr.bf16.gmra.16.mxu2 }
 0x1d7   :  { %v1013_v63 = vpop.f32.mrf.mxu3 }
 0x1da   :  { %2507 = vmatmul.lmr.bf16.gmra.16.mxu2 }
 0x1df   :  { %v1015_v0 = vpop.f32.mrf.mxu3 }
 0x1e2   :  { %2508 = vmatmul.lmr.bf16.gmra.16.mxu2 }
 0x1e7   :  { %v1018_v7 = vpop.f32.mrf.mxu3 }
 0x1ea   :  { %2509 = vmatmul.lmr.bf16.gmra.16.mxu2 }
 0x1ef   :  { %v1020_v18 = vpop.f32.mrf.mxu3 }
 0x1f2   :  { %2510 = vmatmul.lmr.bf16.gmra.16.mxu2 }
 0x1f7   :  { %v1023_v28 = vpop.f32.mrf.mxu3 }
 0x1fa   :  { %2511 = vmatmul.lmr.bf16.gmra.16.mxu2 }
 0x1ff   :  { %v1025_v38 = vpop.f32.mrf.mxu3 }
 0x205   :  { %v895_v1 = vpop.f32.mrf.mxu2 }
 0x206   :  { %v1009_v2 = vadd.f32 %v1008_v58, %v895_v1  ;;  %v1057_v1 = vld [vmem:[%s3290_s1 + $0x48] sm:$0xff] }
 0x207   :  { %v1028_v48 = vpop.f32.mrf.mxu3 }
 0x208   :  { %v1064_v9 = vadd.f32 %v1048_v3, %v1009_v2 }
 0x20a   :  { %v1080_v13 = vmax.f32 %v1064_v9, 0.0 }
 0x20d   :  { %v897_v4 = vpop.f32.mrf.mxu2 }
 0x20e   :  { %v1011_v10 = vadd.f32 %v1010_v61, %v897_v4 }
 0x20f   :  { %v1030_v55 = vpop.f32.mrf.mxu3 }
 0x210   :  { %v1065_v12 = vadd.f32 %v1049_v5, %v1011_v10 }
 0x212   :  { %v1081_v14 = vmax.f32 %v1065_v12, 0.0 }
 0x214   :  { %v1096_v15 = vpack.c.bf16 %v1081_v14, %v1080_v13  ;;  %v1058_v14 = vld [vmem:[%s3290_s1 + $0x50] sm:$0xff] }
 0x215   :  { %v900_v16 = vpop.f32.mrf.mxu2 }
 0x216   :  { %1176 = vmatmul.bf16.vlgmr.msrb.gmra.mxu0 %v1096_v15  ;;  %v1014_v19 = vadd.f32 %v1013_v63, %v900_v16  ;;  %v1056_v63 = vld [vmem:[%s3290_s1 + $0x40] sm:$0xff]  ;;  %v1059_v16 = vld [vmem:[%s3290_s1 + $0x58] sm:$0xff] }
 0x217   :  { %v1033_v61 = vpop.f32.mrf.mxu3 }
 0x218   :  { %v1066_v24 = vadd.f32 %v1050_v21, %v1014_v19 }
 0x21a   :  { %v1082_v30 = vmax.f32 %v1066_v24, 0.0 }
 0x21d   :  { %v902_v22 = vpop.f32.mrf.mxu2 }
 0x21e   :  { %v1016_v26 = vadd.f32 %v1015_v0, %v902_v22 }
 0x21f   :  { %v1035_v9 = vpop.f32.mrf.mxu3 }
 0x220   :  { %v1067_v27 = vadd.f32 %v1051_v23, %v1016_v26 }
 0x222   :  { %v1083_v31 = vmax.f32 %v1067_v27, 0.0 }
 0x224   :  { %v1097_v32 = vpack.c.bf16 %v1083_v31, %v1082_v30  ;;  %v1060_v31 = vld [vmem:[%s3290_s1 + $0x60] sm:$0xff] }
 0x225   :  { %v905_v33 = vpop.f32.mrf.mxu2 }
 0x226   :  { %1181 = vmatmul.bf16.gmra.mxu0 %v1097_v32  ;;  %v1019_v35 = vadd.f32 %v1018_v7, %v905_v33  ;;  %v1061_v33 = vld [vmem:[%s3290_s1 + $0x68] sm:$0xff] }
 0x228   :  { %v1068_v41 = vadd.f32 %v1052_v36, %v1019_v35 }
 0x22a   :  { %v1084_v44 = vmax.f32 %v1068_v41, 0.0 }
 0x22d   :  { %v907_v39 = vpop.f32.mrf.mxu2 }
 0x22e   :  { %v1021_v42 = vadd.f32 %v1020_v18, %v907_v39  ;;  %v1038_v18 = vpop.f32.mrf.mxu3 }
 0x230   :  { %v1069_v43 = vadd.f32 %v1053_v40, %v1021_v42 }
 0x232   :  { %v1085_v45 = vmax.f32 %v1069_v43, 0.0 }
 0x234   :  { %v1098_v46 = vpack.c.bf16 %v1085_v45, %v1084_v44  ;;  %v1062_v45 = vld [vmem:[%s3290_s1 + $0x70] sm:$0xff] }
 0x235   :  { %v910_v47 = vpop.f32.mrf.mxu2 }
 0x236   :  { %1186 = vmatmul.bf16.gmra.mxu0 %v1098_v46  ;;  %v1024_v49 = vadd.f32 %v1023_v28, %v910_v47  ;;  %v1040_v28 = vpop.f32.mrf.mxu3 }
 0x238   :  { %v1070_v53 = vadd.f32 %v1054_v50, %v1024_v49 }
 0x23a   :  { %v1086_v57 = vmax.f32 %v1070_v53, 0.0 }
 0x23d   :  { %v912_v51 = vpop.f32.mrf.mxu2 }
 0x23e   :  { %v1026_v54 = vadd.f32 %v1025_v38, %v912_v51  ;;  %v1043_v39 = vpop.f32.mrf.mxu3 }
 0x240   :  { %v1071_v56 = vadd.f32 %v1055_v52, %v1026_v54 }
 0x242   :  { %v1087_v58 = vmax.f32 %v1071_v56, 0.0 }
 0x244   :  { %v1099_v59 = vpack.c.bf16 %v1087_v58, %v1086_v57 }
 0x245   :  { %v915_v60 = vpop.f32.mrf.mxu2 }
 0x246   :  { %1191 = vmatmul.bf16.gmra.mxu0 %v1099_v59  ;;  %v1029_v62 = vadd.f32 %v1028_v48, %v915_v60  ;;  %v1045_v46 = vpop.f32.mrf.mxu3  ;;  %v1063_v48 = vld [vmem:[%s3290_s1 + $0x78] sm:$0xff] }
 0x248   :  { %v1072_v2 = vadd.f32 %v1056_v63, %v1029_v62 }
 0x24a   :  { %v1088_v5 = vmax.f32 %v1072_v2, 0.0 }
 0x24d   :  { %v917_v0 = vpop.f32.mrf.mxu2 }
 0x24e   :  { %v1031_v3 = vadd.f32 %v1030_v55, %v917_v0 }
 0x250   :  { %v1073_v4 = vadd.f32 %v1057_v1, %v1031_v3  ;;  %v2862_v3 = vmov 0  }
 0x251   :  { %2585 = vset.pattern.permute.xlu0 %v2862_v3  ;;  %2586 = vset.pattern.permute.xlu1 %v2862_v3 }
 0x252   :  { %v1089_v7 = vmax.f32 %v1073_v4, 0.0  ;;  %v526_v4 = vld [vmem:[%s3292_s3] sm:$0xff]  ;;  %2587 = vset.pattern.permute.xlu2 %v2862_v3 }
 0x253   :  { %545 = vperm.xlu0 %2585, %v526_v4  }
 0x254   :  { %v1100_v10 = vpack.c.bf16 %v1089_v7, %v1088_v5  ;;  %v527_v7 = vld [vmem:[%s3292_s3 + $0x8] sm:$0xff] }
 0x255   :  { %v920_v12 = vpop.f32.mrf.mxu2 }
 0x256   :  { %1196 = vmatmul.bf16.gmra.mxu0 %v1100_v10  ;;  %v1034_v13 = vadd.f32 %v1033_v61, %v920_v12  ;;  %v532_v10 = vld [vmem:[%s3292_s3 + $0x30] sm:$0xff] }
 0x258   :  { %v1074_v19 = vadd.f32 %v1058_v14, %v1034_v13  ;;  %v528_v13 = vld [vmem:[%s3292_s3 + $0x10] sm:$0xff]  ;;  %v535_v14 = vld [vmem:[%s3292_s3 + $0x48] sm:$0xff] }
 0x259   :  { %555 = vperm.xlu1 %2586, %v528_v13  }
 0x25a   :  { %v1090_v23 = vmax.f32 %v1074_v19, 0.0  ;;  %v538_v19 = vld [vmem:[%s3292_s3 + $0x60] sm:$0xff] }
 0x25b   :  { %550 = vperm.xlu0 %2585, %v527_v7  }
 0x25d   :  { %v922_v15 = vpop.f32.mrf.mxu2 }
 0x25e   :  { %v1036_v21 = vadd.f32 %v1035_v9, %v922_v15 }
 0x260   :  { %v1075_v22 = vadd.f32 %v1059_v16, %v1036_v21 }
 0x262   :  { %v1091_v24 = vmax.f32 %v1075_v22, 0.0 }
 0x263   :  { %575 = vperm.xlu0 %2585, %v532_v10  }
 0x264   :  { %v1101_v26 = vpack.c.bf16 %v1091_v24, %v1090_v23  ;;  %v533_v23 = vld [vmem:[%s3292_s3 + $0x38] sm:$0xff] }
 0x265   :  { %v925_v27 = vpop.f32.mrf.mxu2  ;;  %v541_v24 = vld [vmem:[%s3292_s3 + $0x78] sm:$0xff] }
 0x266   :  { %1201 = vmatmul.bf16.gmra.mxu0 %v1101_v26  ;;  %v1039_v30 = vadd.f32 %v1038_v18, %v925_v27  ;;  %v529_v18 = vld [vmem:[%s3292_s3 + $0x18] sm:$0xff] }
 0x267   :  { %560 = vperm.xlu1 %2586, %v529_v18  }
 0x268   :  { %v1076_v35 = vadd.f32 %v1060_v31, %v1039_v30 }
 0x26a   :  { %v1092_v40 = vmax.f32 %v1076_v35, 0.0  ;;  %v530_v35 = vld [vmem:[%s3292_s3 + $0x20] sm:$0xff] }
 0x26b   :  { %590 = vperm.xlu0 %2585, %v535_v14   ;;  %565 = vperm.xlu2 %2587, %v530_v35  }
 0x26d   :  { %v927_v32 = vpop.f32.mrf.mxu2 }
 0x26e   :  { %v1041_v36 = vadd.f32 %v1040_v28, %v927_v32  ;;  %v536_v28 = vld [vmem:[%s3292_s3 + $0x50] sm:$0xff]  ;;  %v539_v32 = vld [vmem:[%s3292_s3 + $0x68] sm:$0xff] }
 0x26f   :  { %580 = vperm.xlu1 %2586, %v533_v23   ;;  %v2292_v23 = vld [vmem:[#allocation5 + $0x28] sm:$0xff] }
 0x270   :  { %v1077_v38 = vadd.f32 %v1061_v33, %v1041_v36  ;;  %v531_v36 = vld [vmem:[%s3292_s3 + $0x28] sm:$0xff] }
 0x272   :  { %v1093_v41 = vmax.f32 %v1077_v38, 0.0  ;;  %v534_v38 = vld [vmem:[%s3292_s3 + $0x40] sm:$0xff] }
 0x273   :  { %605 = vperm.xlu0 %2585, %v538_v19   ;;  %570 = vperm.xlu2 %2587, %v531_v36   ;;  %v2293_v36 = vld [vmem:[#allocation5 + $0x30] sm:$0xff] }
 0x274   :  { %v1102_v42 = vpack.c.bf16 %v1093_v41, %v1092_v40  ;;  %v2302_v40 = vld [vmem:[#allocation14 + $0x38] sm:$0xff]  ;;  %v2309_v41 = vld [vmem:[#allocation16 + $0x30] sm:$0xff] }
 0x275   :  { %v930_v43 = vpop.f32.mrf.mxu2  ;;  %1590 = vmatpush.bf16.msra.mxu3 %v2302_v40  ;;  %1446 = vmatpush.bf16.msra.mxu2 %v2309_v41 }
 0x276   :  { %1206 = vmatmul.bf16.gmra.mxu0 %v1102_v42  ;;  %v1044_v44 = vadd.f32 %v1043_v39, %v930_v43  ;;  %v540_v39 = vld [vmem:[%s3292_s3 + $0x70] sm:$0xff]  ;;  %v2299_v43 = vld [vmem:[#allocation14 + $0x20] sm:$0xff] }
 0x277   :  { %595 = vperm.xlu1 %2586, %v536_v28   ;;  %v2300_v42 = vld [vmem:[#allocation14 + $0x28] sm:$0xff] }
 0x278   :  { %v1078_v49 = vadd.f32 %v1062_v45, %v1044_v44  ;;  %v2298_v44 = vld [vmem:[#allocation14 + $0x18] sm:$0xff]  ;;  %v2297_v45 = vld [vmem:[#allocation14 + $0x10] sm:$0xff] }
 0x279   :  { %1591 = vmatpush.bf16.msra.mxu3 %v2301_v29  ;;  %1447 = vmatpush.bf16.msra.mxu2 %v2308_v25  ;;  %v2294_v25 = vld [vmem:[#allocation5 + $0x38] sm:$0xff] }
 0x27a   :  { %v1094_v52 = vmax.f32 %v1078_v49, 0.0  ;;  %v2295_v49 = vld [vmem:[#allocation14] sm:$0xff] }
 0x27b   :  { %620 = vperm.xlu0 %2585, %v541_v24   ;;  %585 = vperm.xlu2 %2587, %v534_v38  }
 0x27d   :  { %v932_v47 = vpop.f32.mrf.mxu2  ;;  %1592 = vmatpush.bf16.msra.mxu3 %v2300_v42  ;;  %1448 = vmatpush.bf16.msra.mxu2 %v2307_v20 }
 0x27e   :  { %v1046_v50 = vadd.f32 %v1045_v46, %v932_v47  ;;  %v2306_v46 = vld [vmem:[#allocation16 + $0x18] sm:$0xff]  ;;  %v2296_v47 = vld [vmem:[#allocation14 + $0x8] sm:$0xff] }
 0x27f   :  { %610 = vperm.xlu1 %2586, %v539_v32  }
 0x280   :  { %v1079_v51 = vadd.f32 %v1063_v48, %v1046_v50  ;;  %v2305_v48 = vld [vmem:[#allocation16 + $0x10] sm:$0xff]  ;;  %v2304_v50 = vld [vmem:[#allocation16 + $0x8] sm:$0xff] }
 0x281   :  { %1593 = vmatpush.bf16.msra.mxu3 %v2299_v43  ;;  %1449 = vmatpush.bf16.msra.mxu2 %v2306_v46 }
 0x282   :  { %v1095_v53 = vmax.f32 %v1079_v51, 0.0  ;;  %v2303_v51 = vld [vmem:[#allocation16] sm:$0xff] }
 0x283   :  { %600 = vperm.xlu2 %2587, %v537_v37  }
 0x284   :  { %v1103_v54 = vpack.c.bf16 %v1095_v53, %v1094_v52  ;;  %v2288_v52 = vld [vmem:[#allocation5 + $0x8] sm:$0xff] }
 0x285   :  { %1594 = vmatpush.bf16.msra.mxu3 %v2298_v44  ;;  %1450 = vmatpush.bf16.msra.mxu2 %v2305_v48 }
 0x286   :  { %1211 = vmatmul.bf16.gmra.mxu0 %v1103_v54 }
 0x289   :  { %1595 = vmatpush.bf16.msra.mxu3 %v2297_v45  ;;  %1451 = vmatpush.bf16.msra.mxu2 %v2304_v50 }
 0x28b   :  { %615 = vperm.xlu2 %2587, %v540_v39  }
 0x28d   :  { %1596 = vmatpush.bf16.msra.mxu3 %v2296_v47  ;;  %1452 = vmatpush.bf16.msra.mxu2 %v2303_v51  ;;  %v2317_v51 = vld [vmem:[#allocation17 + $0x30] sm:$0xff] }
 0x291   :  { %1597 = vmatpush.bf16.msra.mxu3 %v2295_v49 }
 0x293   :  { %v1177_v55 = vpop.f32.mrf.mxu0 }
 0x294   :  { %1598 = vmatmul.bf16.vlgmr.msra.gmra.mxu3 %v2287_v17  ;;  %v2318_v17 = vld [vmem:[#allocation17 + $0x38] sm:$0xff] }
 0x295   :  { %1751 = vmatpush.bf16.msra.mxu0 %v2318_v17 }
 0x299   :  { %1752 = vmatpush.bf16.msra.mxu0 %v2317_v51 }
 0x29b   :  { %v1179_v56 = vpop.f32.mrf.mxu0 }
 0x29c   :  { %v1233_v33 = vpack.c.bf16 %v1179_v56, %v1177_v55  ;;  %v3223_v55 = vld [vmem:[%s3296_s7] ss:$0 sm:$0xff] }
 0x2a3   :  { %v1182_v57 = vpop.f32.mrf.mxu0 }
 0x2a4   :  { %1603 = vmatmul.bf16.gmra.mxu3 %v2288_v52 }
 0x2ab   :  { %v1184_v58 = vpop.f32.mrf.mxu0 }
 0x2ac   :  { %v1234_v31 = vpack.c.bf16 %v1184_v58, %v1182_v57 }
 0x2b3   :  { %v1187_v59 = vpop.f32.mrf.mxu0 }
 0x2b4   :  { %1608 = vmatmul.bf16.gmra.mxu3 %v2289_v11 }
 0x2bb   :  { %v1189_v60 = vpop.f32.mrf.mxu0 }
 0x2bc   :  { %v1235_v30 = vpack.c.bf16 %v1189_v60, %v1187_v59 }
 0x2c3   :  { %v1192_v61 = vpop.f32.mrf.mxu0 }
 0x2c5   :  { %v546_v53 = vpop.permute.xlu0 %545 }
 0x2c6   :  { %v626_v56 = vmul.f32 %v3223_v55, %v546_v53  ;;  %v2316_v53 = vld [vmem:[#allocation17 + $0x28] sm:$0xff] }
 0x2c7   :  { %1753 = vmatpush.bf16.msra.mxu0 %v2316_v53 }
 0x2cb   :  { %v1194_v62 = vpop.f32.mrf.mxu0 }
 0x2cc   :  { %v1236_v27 = vpack.c.bf16 %v1194_v62, %v1192_v61  ;;  %v556_v61 = vpop.permute.xlu1 %555 }
 0x2cd   :  { %v551_v57 = vpop.permute.xlu0 %550 }
 0x2ce   :  { %v627_v58 = vmul.f32 %v3223_v55, %v551_v57 }
 0x2d3   :  { %v1197_v63 = vpop.f32.mrf.mxu0 }
 0x2db   :  { %v1199_v0 = vpop.f32.mrf.mxu0 }
 0x2dc   :  { %v1237_v26 = vpack.c.bf16 %v1199_v0, %v1197_v63  ;;  %v2290_v63 = vld [vmem:[#allocation5 + $0x18] sm:$0xff]  ;;  %v628_v0 = vmul.f32 %v3223_v55, %v556_v61 }
 0x2dd   :  { %1613 = vmatmul.bf16.gmra.mxu3 %v2290_v63 }
 0x2e3   :  { %v1202_v1 = vpop.f32.mrf.mxu0 }
 0x2eb   :  { %v1204_v2 = vpop.f32.mrf.mxu0 }
 0x2ec   :  { %v1238_v22 = vpack.c.bf16 %v1204_v2, %v1202_v1  ;;  %v561_v1 = vpop.permute.xlu1 %560 }
 0x2ed   :  { %v629_v2 = vmul.f32 %v3223_v55, %v561_v1 }
 0x2f3   :  { %v1207_v5 = vpop.f32.mrf.mxu0 }
 0x2f4   :  { %v581_v24 = vpop.permute.xlu1 %580 }
 0x2fb   :  { %v1209_v9 = vpop.f32.mrf.mxu0 }
 0x2fc   :  { %v1239_v21 = vpack.c.bf16 %v1209_v9, %v1207_v5  ;;  %v566_v9 = vpop.permute.xlu2 %565  ;;  %v596_v20 = vpop.permute.xlu1 %595 }
 0x2fd   :  { %v630_v13 = vmul.f32 %v3223_v55, %v566_v9  ;;  %v636_v46 = vmul.f32 %v3223_v55, %v596_v20 }
 0x303   :  { %v1212_v12 = vpop.f32.mrf.mxu0 }
 0x304   :  { %v571_v14 = vpop.permute.xlu2 %570 }
 0x30b   :  { %v1214_v15 = vpop.f32.mrf.mxu0 }
 0x30c   :  { %v1240_v16 = vpack.c.bf16 %v1214_v15, %v1212_v12  ;;  %v2291_v12 = vld [vmem:[#allocation5 + $0x20] sm:$0xff]  ;;  %v631_v15 = vmul.f32 %v3223_v55, %v571_v14  ;;  %v586_v38 = vpop.permute.xlu2 %585  ;;  %v2311_v14 = vld [vmem:[#allocation17] sm:$0xff] }
 0x30d   :  { %1618 = vmatmul.bf16.gmra.mxu3 %v2291_v12  ;;  %v634_v39 = vmul.f32 %v3223_v55, %v586_v38 }
 0x30e   :  { %1241 = vmatpush.bf16.msra.mxu1 %v1240_v16 }
 0x312   :  { %1242 = vmatpush.bf16.msra.mxu1 %v1239_v21 }
 0x314   :  { %v601_v44 = vpop.permute.xlu2 %600 }
 0x315   :  { %v637_v45 = vmul.f32 %v3223_v55, %v601_v44 }
 0x316   :  { %1243 = vmatpush.bf16.msra.mxu1 %v1238_v22 }
 0x317   :  { %v1599_v63 = vpop.f32.mrf.mxu3 }
 0x31a   :  { %1244 = vmatpush.bf16.msra.mxu1 %v1237_v26  ;;  %v576_v26 = vpop.permute.xlu0 %575 }
 0x31b   :  { %v632_v28 = vmul.f32 %v3223_v55, %v576_v26 }
 0x31c   :  { %v616_v1 = vpop.permute.xlu2 %615 }
 0x31d   :  { %1623 = vmatmul.bf16.gmra.mxu3 %v2292_v23 }
 0x31e   :  { %1245 = vmatpush.bf16.msra.mxu1 %v1236_v27  ;;  %v633_v27 = vmul.f32 %v3223_v55, %v581_v24 }
 0x322   :  { %1246 = vmatpush.bf16.msra.mxu1 %v1235_v30  ;;  %v591_v37 = vpop.permute.xlu0 %590 }
 0x323   :  { %v635_v34 = vmul.f32 %v3223_v55, %v591_v37 }
 0x326   :  { %1247 = vmatpush.bf16.msra.mxu1 %v1234_v31 }
 0x32a   :  { %1248 = vmatpush.bf16.msra.mxu1 %v1233_v33  ;;  %v606_v11 = vpop.permute.xlu0 %605 }
 0x32d   :  { %2096 = vmatmul.msk.bf16.vlgmr.msra.gmra.mxu1 %vm3092_vm9, %v2861_v8  ;;  %1628 = vmatmul.bf16.gmra.mxu3 %v2293_v36 }
 0x33d   :  { %2098 = vmatmul.msk.bf16.gmra.mxu1 %vm3077_vm15, %v2861_v8  ;;  %1633 = vmatmul.bf16.gmra.mxu3 %v2294_v25 }
 0x34d   :  { %2100 = vmatmul.msk.bf16.gmra.mxu1 %vm3063_vm6, %v2861_v8 }
 0x35d   :  { %2102 = vmatmul.msk.bf16.gmra.mxu1 %vm3049_vm14, %v2861_v8 }
 0x36d   :  { %2104 = vmatmul.msk.bf16.gmra.mxu1 %vm3035_vm7, %v2861_v8 }
 0x37d   :  { %2106 = vmatmul.msk.bf16.gmra.mxu1 %vm3021_vm0, %v2861_v8 }
 0x38d   :  { %2108 = vmatmul.msk.bf16.gmra.mxu1 %vm3007_vm10, %v2861_v8 }
 0x39d   :  { %2110 = vmatmul.msk.bf16.gmra.mxu1 %vm2991_vm2, %v2861_v8 }
 0x3aa   :  { %v1250_v54 = vpop.f32.mrf.mxu1 }
 0x3ab   :  { %v1290_v60 = vadd.f32 %v1250_v54, %v626_v56  ;;  %v611_v54 = vpop.permute.xlu1 %610  ;;  %v638_v56 = vmul.f32 %v3223_v55, %v606_v11 }
 0x3ac   :  { %v639_v57 = vmul.f32 %v3223_v55, %v611_v54 }
 0x3b2   :  { %v1252_v59 = vpop.f32.mrf.mxu1 }
 0x3b3   :  { %v1291_v6 = vadd.f32 %v1252_v59, %v627_v58  ;;  %v2315_v58 = vld [vmem:[#allocation17 + $0x20] sm:$0xff] }
 0x3b4   :  { %1754 = vmatpush.bf16.msra.mxu0 %v2315_v58 }
 0x3b5   :  { %v1373_v8 = vpack.c.bf16 %v1291_v6, %v1290_v60 }
 0x3b7   :  { %1453 = vmatmul.bf16.vlgmr.msra.gmra.mxu2 %v1373_v8 }
 0x3ba   :  { %v1255_v62 = vpop.f32.mrf.mxu1 }
 0x3bb   :  { %v1292_v4 = vadd.f32 %v1255_v62, %v628_v0  ;;  %v2314_v62 = vld [vmem:[#allocation17 + $0x18] sm:$0xff]  ;;  %v621_v0 = vpop.permute.xlu0 %620 }
 0x3bc   :  { %1755 = vmatpush.bf16.msra.mxu0 %v2314_v62 }
 0x3c2   :  { %v1257_v3 = vpop.f32.mrf.mxu1 }
 0x3c3   :  { %v1293_v5 = vadd.f32 %v1257_v3, %v629_v2  ;;  %v2313_v2 = vld [vmem:[#allocation17 + $0x10] sm:$0xff]  ;;  %v641_v3 = vmul.f32 %v3223_v55, %v621_v0 }
 0x3c4   :  { %1756 = vmatpush.bf16.msra.mxu0 %v2313_v2 }
 0x3c5   :  { %v1374_v7 = vpack.c.bf16 %v1293_v5, %v1292_v4  ;;  %v640_v4 = vmul.f32 %v3223_v55, %v616_v1 }
 0x3c7   :  { %1458 = vmatmul.bf16.gmra.mxu2 %v1374_v7  ;;  %v2312_v7 = vld [vmem:[#allocation17 + $0x8] sm:$0xff] }
 0x3c8   :  { %1757 = vmatpush.bf16.msra.mxu0 %v2312_v7 }
 0x3ca   :  { %v1260_v10 = vpop.f32.mrf.mxu1 }
 0x3cb   :  { %v1294_v18 = vadd.f32 %v1260_v10, %v630_v13  ;;  %v1601_v13 = vpop.f32.mrf.mxu3 }
 0x3cc   :  { %1758 = vmatpush.bf16.msra.mxu0 %v2311_v14 }
 0x3d2   :  { %v1262_v16 = vpop.f32.mrf.mxu1 }
 0x3d3   :  { %v1295_v19 = vadd.f32 %v1262_v16, %v631_v15  ;;  %v1604_v15 = vpop.f32.mrf.mxu3 }
 0x3d5   :  { %v1375_v21 = vpack.c.bf16 %v1295_v19, %v1294_v18 }
 0x3d7   :  { %1463 = vmatmul.bf16.gmra.mxu2 %v1375_v21  ;;  %v3244_v21 = vld [vmem:[%s3299_s10] ss:$0 sm:$0xff] }
 0x3da   :  { %v1265_v22 = vpop.f32.mrf.mxu1 }
 0x3db   :  { %v1296_v31 = vadd.f32 %v1265_v22, %v632_v28  ;;  %v1606_v18 = vpop.f32.mrf.mxu3 }
 0x3e2   :  { %v1267_v30 = vpop.f32.mrf.mxu1 }
 0x3e3   :  { %v1297_v32 = vadd.f32 %v1267_v30, %v633_v27  ;;  %v1609_v24 = vpop.f32.mrf.mxu3 }
 0x3e5   :  { %v1376_v33 = vpack.c.bf16 %v1297_v32, %v1296_v31 }
 0x3e7   :  { %1468 = vmatmul.bf16.gmra.mxu2 %v1376_v33 }
 0x3ea   :  { %v1270_v35 = vpop.f32.mrf.mxu1 }
 0x3eb   :  { %v1298_v41 = vadd.f32 %v1270_v35, %v634_v39  ;;  %v1611_v32 = vpop.f32.mrf.mxu3 }
 0x3f2   :  { %v1272_v40 = vpop.f32.mrf.mxu1 }
 0x3f3   :  { %v1299_v29 = vadd.f32 %v1272_v40, %v635_v34  ;;  %v1614_v40 = vpop.f32.mrf.mxu3 }
 0x3f5   :  { %v1377_v42 = vpack.c.bf16 %v1299_v29, %v1298_v41 }
 0x3f7   :  { %1473 = vmatmul.bf16.gmra.mxu2 %v1377_v42 }
 0x3fa   :  { %v1275_v43 = vpop.f32.mrf.mxu1 }
 0x3fb   :  { %v1300_v48 = vadd.f32 %v1275_v43, %v636_v46  ;;  %v1616_v25 = vpop.f32.mrf.mxu3 }
 0x402   :  { %v1277_v47 = vpop.f32.mrf.mxu1 }
 0x403   :  { %v1301_v49 = vadd.f32 %v1277_v47, %v637_v45 }
 0x405   :  { %v1378_v50 = vpack.c.bf16 %v1301_v49, %v1300_v48 }
 0x407   :  { %1478 = vmatmul.bf16.gmra.mxu2 %v1378_v50  ;;  %v1619_v50 = vpop.f32.mrf.mxu3 }
 0x40a   :  { %v1280_v52 = vpop.f32.mrf.mxu1 }
 0x40b   :  { %v1302_v60 = vadd.f32 %v1280_v52, %v638_v56 }
 0x40f   :  { %v1621_v11 = vpop.f32.mrf.mxu3 }
 0x412   :  { %v1282_v59 = vpop.f32.mrf.mxu1 }
 0x413   :  { %v1303_v6 = vadd.f32 %v1282_v59, %v639_v57 }
 0x415   :  { %v1379_v8 = vpack.c.bf16 %v1303_v6, %v1302_v60 }
 0x417   :  { %1483 = vmatmul.bf16.gmra.mxu2 %v1379_v8  ;;  %v1624_v6 = vpop.f32.mrf.mxu3 }
 0x41a   :  { %v1285_v61 = vpop.f32.mrf.mxu1 }
 0x41b   :  { %v1304_v9 = vadd.f32 %v1285_v61, %v640_v4 }
 0x41f   :  { %v1626_v4 = vpop.f32.mrf.mxu3 }
 0x422   :  { %v1287_v5 = vpop.f32.mrf.mxu1 }
 0x423   :  { %v1305_v10 = vadd.f32 %v1287_v5, %v641_v3 }
 0x425   :  { %v1380_v12 = vpack.c.bf16 %v1305_v10, %v1304_v9 }
 0x427   :  { %1488 = vmatmul.bf16.gmra.mxu2 %v1380_v12  ;;  %v1629_v12 = vpop.f32.mrf.mxu3 }
 0x43a   :  { %v1454_v16 = vpop.f32.mrf.mxu2 }
 0x43b   :  { %v1600_v19 = vadd.f32 %v1599_v63, %v1454_v16 }
 0x43d   :  { %v1643_v22 = vadd.f32 %v3244_v21, %v1600_v19  ;;  %v1631_v19 = vpop.f32.mrf.mxu3 }
 0x43f   :  { %v1659_v27 = vmax.f32 %v1643_v22, 0.0 }
 0x442   :  { %v1456_v55 = vpop.f32.mrf.mxu2 }
 0x443   :  { %v1602_v23 = vadd.f32 %v1601_v13, %v1456_v55 }
 0x445   :  { %v1644_v26 = vadd.f32 %v3244_v21, %v1602_v23 }
 0x447   :  { %v1660_v28 = vmax.f32 %v1644_v26, 0.0 }
 0x449   :  { %v1675_v30 = vpack.c.bf16 %v1660_v28, %v1659_v27 }
 0x44a   :  { %v1459_v31 = vpop.f32.mrf.mxu2 }
 0x44b   :  { %1759 = vmatmul.bf16.vlgmr.msra.gmra.mxu0 %v1675_v30  ;;  %v1605_v33 = vadd.f32 %v1604_v15, %v1459_v31  ;;  %v1634_v30 = vpop.f32.mrf.mxu3 }
 0x44d   :  { %v1645_v36 = vadd.f32 %v3244_v21, %v1605_v33 }
 0x44f   :  { %v1661_v39 = vmax.f32 %v1645_v36, 0.0 }
 0x452   :  { %v1461_v35 = vpop.f32.mrf.mxu2 }
 0x453   :  { %v1607_v38 = vadd.f32 %v1606_v18, %v1461_v35  ;;  %v1636_v36 = vpop.f32.mrf.mxu3 }
 0x455   :  { %v1646_v37 = vadd.f32 %v3244_v21, %v1607_v38 }
 0x457   :  { %v1662_v34 = vmax.f32 %v1646_v37, 0.0 }
 0x459   :  { %v1676_v41 = vpack.c.bf16 %v1662_v34, %v1661_v39 }
 0x45a   :  { %v1464_v29 = vpop.f32.mrf.mxu2 }
 0x45b   :  { %1764 = vmatmul.bf16.gmra.mxu0 %v1676_v41  ;;  %v1610_v42 = vadd.f32 %v1609_v24, %v1464_v29 }
 0x45d   :  { %v1647_v44 = vadd.f32 %v3244_v21, %v1610_v42  ;;  %v3265_v42 = vld [vmem:[%s3301_s12] ss:$0 sm:$0xff]  ;;  %s2863_s12 = smov [#allocation19]  }
 0x45e   :  { %s1852_s24 = sshll.u32 %s2863_s12, 4  ;;  %s1853_s24 = int_to_ptr.vmem [resolvable:$true] %s1852_s24 }
 0x45f   :  { %v1663_v46 = vmax.f32 %v1647_v44, 0.0 }
 0x462   :  { %v1466_v43 = vpop.f32.mrf.mxu2 }
 0x463   :  { %v1612_v20 = vadd.f32 %v1611_v32, %v1466_v43 }
 0x465   :  { %v1648_v45 = vadd.f32 %v3244_v21, %v1612_v20 }
 0x467   :  { %v1664_v47 = vmax.f32 %v1648_v45, 0.0 }
 0x469   :  { %v1677_v48 = vpack.c.bf16 %v1664_v47, %v1663_v46 }
 0x46a   :  { %v1469_v49 = vpop.f32.mrf.mxu2 }
 0x46b   :  { %1769 = vmatmul.bf16.gmra.mxu0 %v1677_v48  ;;  %v1615_v17 = vadd.f32 %v1614_v40, %v1469_v49 }
 0x46d   :  { %v1649_v52 = vadd.f32 %v3244_v21, %v1615_v17 }
 0x46f   :  { %v1665_v56 = vmax.f32 %v1649_v52, 0.0 }
 0x472   :  { %v1471_v51 = vpop.f32.mrf.mxu2 }
 0x473   :  { %v1617_v53 = vadd.f32 %v1616_v25, %v1471_v51 }
 0x475   :  { %v1650_v54 = vadd.f32 %v3244_v21, %v1617_v53 }
 0x477   :  { %v1666_v57 = vmax.f32 %v1650_v54, 0.0 }
 0x479   :  { %v1678_v58 = vpack.c.bf16 %v1666_v57, %v1665_v56 }
 0x47a   :  { %v1474_v59 = vpop.f32.mrf.mxu2 }
 0x47b   :  { %1774 = vmatmul.bf16.gmra.mxu0 %v1678_v58  ;;  %v1620_v60 = vadd.f32 %v1619_v50, %v1474_v59 }
 0x47d   :  { %v1651_v61 = vadd.f32 %v3244_v21, %v1620_v60 }
 0x47f   :  { %v1667_v0 = vmax.f32 %v1651_v61, 0.0 }
 0x482   :  { %v1476_v8 = vpop.f32.mrf.mxu2 }
 0x483   :  { %v1622_v62 = vadd.f32 %v1621_v11, %v1476_v8 }
 0x485   :  { %v1652_v63 = vadd.f32 %v3244_v21, %v1622_v62 }
 0x487   :  { %v1668_v1 = vmax.f32 %v1652_v63, 0.0 }
 0x489   :  { %v1679_v2 = vpack.c.bf16 %v1668_v1, %v1667_v0 }
 0x48a   :  { %v1479_v3 = vpop.f32.mrf.mxu2 }
 0x48b   :  { %1779 = vmatmul.bf16.gmra.mxu0 %v1679_v2  ;;  %v1625_v5 = vadd.f32 %v1624_v6, %v1479_v3 }
 0x48d   :  { %v1653_v9 = vadd.f32 %v3244_v21, %v1625_v5 }
 0x48f   :  { %v1669_v14 = vmax.f32 %v1653_v9, 0.0 }
 0x492   :  { %v1481_v7 = vpop.f32.mrf.mxu2 }
 0x493   :  { %v1627_v10 = vadd.f32 %v1626_v4, %v1481_v7 }
 0x495   :  { %v1654_v13 = vadd.f32 %v3244_v21, %v1627_v10 }
 0x497   :  { %v1670_v15 = vmax.f32 %v1654_v13, 0.0 }
 0x499   :  { %v1680_v16 = vpack.c.bf16 %v1670_v15, %v1669_v14 }
 0x49a   :  { %v1484_v18 = vpop.f32.mrf.mxu2 }
 0x49b   :  { %1784 = vmatmul.bf16.gmra.mxu0 %v1680_v16  ;;  %v1630_v55 = vadd.f32 %v1629_v12, %v1484_v18 }
 0x49d   :  { %v1655_v23 = vadd.f32 %v3244_v21, %v1630_v55 }
 0x49f   :  { %v1671_v27 = vmax.f32 %v1655_v23, 0.0 }
 0x4a2   :  { %v1486_v22 = vpop.f32.mrf.mxu2 }
 0x4a3   :  { %v1632_v24 = vadd.f32 %v1631_v19, %v1486_v22 }
 0x4a5   :  { %v1656_v26 = vadd.f32 %v3244_v21, %v1632_v24 }
 0x4a7   :  { %v1672_v28 = vmax.f32 %v1656_v26, 0.0 }
 0x4a9   :  { %v1681_v31 = vpack.c.bf16 %v1672_v28, %v1671_v27 }
 0x4aa   :  { %v1489_v32 = vpop.f32.mrf.mxu2 }
 0x4ab   :  { %1789 = vmatmul.bf16.gmra.mxu0 %v1681_v31  ;;  %v1635_v33 = vadd.f32 %v1634_v30, %v1489_v32 }
 0x4ad   :  { %v1657_v38 = vadd.f32 %v3244_v21, %v1635_v33 }
 0x4af   :  { %v1673_v34 = vmax.f32 %v1657_v38, 0.0 }
 0x4b2   :  { %v1491_v35 = vpop.f32.mrf.mxu2 }
 0x4b3   :  { %v1637_v37 = vadd.f32 %v1636_v36, %v1491_v35 }
 0x4b5   :  { %v1658_v39 = vadd.f32 %v3244_v21, %v1637_v37 }
 0x4b7   :  { %v1674_v40 = vmax.f32 %v1658_v39, 0.0 }
 0x4b9   :  { %v1682_v41 = vpack.c.bf16 %v1674_v40, %v1673_v34 }
 0x4bb   :  { %1794 = vmatmul.bf16.gmra.mxu0 %v1682_v41 }
 0x4c8   :  { %v1760_v29 = vpop.f32.mrf.mxu0 }
 0x4c9   :  { %v1761_v43 = vadd.f32 %v3265_v42, %v1760_v29 }
 0x4cb   :  { %2591 = vtanh.f32 %v1761_v43 }
 0x4d0   :  { %v1762_v25 = vpop.f32.mrf.mxu0 }
 0x4d1   :  { %v1763_v44 = vadd.f32 %v3265_v42, %v1762_v25  ;;  %v2592_v20 = vpop.eup %2591 }
 0x4d3   :  { %2593 = vtanh.f32 %v1763_v44 }
 0x4d8   :  { %v1765_v45 = vpop.f32.mrf.mxu0 }
 0x4d9   :  { %v2594_v21 = vpop.eup %2593  ;;  %v1766_v47 = vadd.f32 %v3265_v42, %v1765_v45 }
 0x4da   :  { %v2402_v46 = vpack.c.bf16 %v2594_v21, %v2592_v20 }
 0x4db   :  { %2595 = vtanh.f32 %v1766_v47 }
 0x4dc   :  { %2403 = vst [vmem:[#allocation19] sm:$0xff] %v2402_v46  }
 0x4e0   :  { %v1767_v48 = vpop.f32.mrf.mxu0 }
 0x4e1   :  { %v1768_v49 = vadd.f32 %v3265_v42, %v1767_v48  ;;  %v2596_v50 = vpop.eup %2595 }
 0x4e3   :  { %2597 = vtanh.f32 %v1768_v49 }
 0x4e8   :  { %v1770_v17 = vpop.f32.mrf.mxu0 }
 0x4e9   :  { %v2598_v51 = vpop.eup %2597  ;;  %v1771_v53 = vadd.f32 %v3265_v42, %v1770_v17 }
 0x4ea   :  { %v2407_v52 = vpack.c.bf16 %v2598_v51, %v2596_v50 }
 0x4eb   :  { %2599 = vtanh.f32 %v1771_v53 }
 0x4ec   :  { %2453 = vst [vmem:[#allocation19 + $0x8] sm:$0xff] %v2407_v52  }
 0x4f0   :  { %v1772_v54 = vpop.f32.mrf.mxu0 }
 0x4f1   :  { %v1773_v11 = vadd.f32 %v3265_v42, %v1772_v54  ;;  %v2600_v56 = vpop.eup %2599 }
 0x4f3   :  { %2601 = vtanh.f32 %v1773_v11 }
 0x4f8   :  { %v1775_v57 = vpop.f32.mrf.mxu0 }
 0x4f9   :  { %v2602_v58 = vpop.eup %2601  ;;  %v1776_v60 = vadd.f32 %v3265_v42, %v1775_v57 }
 0x4fa   :  { %v2412_v59 = vpack.c.bf16 %v2602_v58, %v2600_v56 }
 0x4fb   :  { %2603 = vtanh.f32 %v1776_v60 }
 0x4fc   :  { %2454 = vst [vmem:[#allocation19 + $0x10] sm:$0xff] %v2412_v59  }
 0x500   :  { %v1777_v6 = vpop.f32.mrf.mxu0 }
 0x501   :  { %v1778_v8 = vadd.f32 %v3265_v42, %v1777_v6  ;;  %v2604_v61 = vpop.eup %2603 }
 0x503   :  { %2605 = vtanh.f32 %v1778_v8 }
 0x508   :  { %v1780_v62 = vpop.f32.mrf.mxu0 }
 0x509   :  { %v2606_v63 = vpop.eup %2605  ;;  %v1781_v1 = vadd.f32 %v3265_v42, %v1780_v62 }
 0x50a   :  { %v2417_v0 = vpack.c.bf16 %v2606_v63, %v2604_v61 }
 0x50b   :  { %2607 = vtanh.f32 %v1781_v1 }
 0x50c   :  { %2455 = vst [vmem:[#allocation19 + $0x18] sm:$0xff] %v2417_v0  }
 0x510   :  { %v1782_v2 = vpop.f32.mrf.mxu0 }
 0x511   :  { %v1783_v3 = vadd.f32 %v3265_v42, %v1782_v2  ;;  %v2608_v4 = vpop.eup %2607 }
 0x513   :  { %2609 = vtanh.f32 %v1783_v3 }
 0x518   :  { %v1785_v5 = vpop.f32.mrf.mxu0 }
 0x519   :  { %v2610_v7 = vpop.eup %2609  ;;  %v1786_v10 = vadd.f32 %v3265_v42, %v1785_v5 }
 0x51a   :  { %v2422_v9 = vpack.c.bf16 %v2610_v7, %v2608_v4 }
 0x51b   :  { %2611 = vtanh.f32 %v1786_v10 }
 0x51c   :  { %2456 = vst [vmem:[#allocation19 + $0x20] sm:$0xff] %v2422_v9  }
 0x520   :  { %v1787_v12 = vpop.f32.mrf.mxu0 }
 0x521   :  { %v1788_v13 = vadd.f32 %v3265_v42, %v1787_v12  ;;  %v2612_v14 = vpop.eup %2611 }
 0x523   :  { %2613 = vtanh.f32 %v1788_v13 }
 0x528   :  { %v1790_v15 = vpop.f32.mrf.mxu0 }
 0x529   :  { %v2614_v16 = vpop.eup %2613  ;;  %v1791_v19 = vadd.f32 %v3265_v42, %v1790_v15 }
 0x52a   :  { %v2427_v18 = vpack.c.bf16 %v2614_v16, %v2612_v14 }
 0x52b   :  { %2615 = vtanh.f32 %v1791_v19 }
 0x52c   :  { %2457 = vst [vmem:[#allocation19 + $0x28] sm:$0xff] %v2427_v18  }
 0x530   :  { %v1792_v55 = vpop.f32.mrf.mxu0 }
 0x531   :  { %v1793_v22 = vadd.f32 %v3265_v42, %v1792_v55  ;;  %v2616_v23 = vpop.eup %2615 }
 0x533   :  { %2617 = vtanh.f32 %v1793_v22 }
 0x538   :  { %v1795_v24 = vpop.f32.mrf.mxu0 }
 0x539   :  { %v2618_v26 = vpop.eup %2617  ;;  %v1796_v28 = vadd.f32 %v3265_v42, %v1795_v24 }
 0x53a   :  { %v2432_v27 = vpack.c.bf16 %v2618_v26, %v2616_v23 }
 0x53b   :  { %2619 = vtanh.f32 %v1796_v28 }
 0x53c   :  { %2458 = vst [vmem:[#allocation19 + $0x30] sm:$0xff] %v2432_v27  }
 0x540   :  { %v1797_v30 = vpop.f32.mrf.mxu0 }
 0x541   :  { %v1798_v31 = vadd.f32 %v3265_v42, %v1797_v30  ;;  %v2620_v32 = vpop.eup %2619 }
 0x543   :  { %2621 = vtanh.f32 %v1798_v31 }
 0x549   :  { %v2622_v33 = vpop.eup %2621 }
 0x54a   :  { %v2437_v35 = vpack.c.bf16 %v2622_v33, %v2620_v32 }
 0x54c   :  { %2459 = vst [vmem:[#allocation19 + $0x38] sm:$0xff] %v2437_v35  }
 0x54d   :  { %1860 = dma.vmem_to_hbm [thread:$0]  %s1853_s24, 1024, %s1855_s9, [#allocation7], %s2853_s2, %s2853_s2, %s2854_s21  }
 0x54e   :  { %2849 = dma.done.wait [#allocation7], 1024  }
 0x54f   :  { %2850 = vsyncadd [#allocation7], 4294966272 }
 0x550   :  { %1865 = vsyncpa [#allocation6], 1 }
 0x551   :  { %1866 = vsyncpa [#allocation9], 1 }
 0x552   :  { %1867 = vsyncpa [#allocation12], 1 }
 0x553   :  { %1868 = vsyncpa [#allocation15], 1 }
 0x554   :  { %1869 = vsyncpa [#allocation18], 1 }
 0x555   :  { %1870 = vsyncpa [#allocation7], 1 }

</bundles_post_ra>
